<compile_context>
chip_gen: v7x
topology: tpu7x:2x2x1
jax: 0.10.0
libtpu: 0.0.40
codegen_flags: <defaults>
</compile_context>

<pallas_src>
import functools

import jax
import jax.numpy as jnp
from jax.experimental import pallas as pl
from jax.experimental.pallas import tpu as pltpu


# --------------------------------------------------------------------------
# Kernel
# --------------------------------------------------------------------------
def _inter_kernel(k, nb_valid, theta_ref, a_ref, b_ref, out_ref):
    # theta_ref: (1, 1, D) f32   (theta_a_inter * theta_b_inter, folded)
    # a_ref:     (bblk, tile_r, D)      row tile of tensor_a (original dtype)
    # b_ref:     (bblk, Nb_pad, D)      tensor_b rows, zero-padded past nb_valid
    # out_ref:   (bblk, tile_r, Nb_pad) lane-dense output slab
    f32 = jnp.float32

    # theta scale in f32 (v5e has no bf16 VALU), then bf16 operands for the MXU.
    ua = (a_ref[...].astype(f32) * theta_ref[...]).astype(jnp.bfloat16)
    ub = b_ref[...].astype(jnp.bfloat16)
    s = jnp.einsum('brd,bnd->brn', ua, ub, preferred_element_type=f32)

    if nb_valid != s.shape[-1]:
        # Mask padded columns out of the top-k competition.
        col = jax.lax.broadcasted_iota(jnp.int32, s.shape, dimension=2)
        s = jnp.where(col < nb_valid, s, -jnp.inf)

    # k-th-largest per-row threshold on the PRE-sigmoid scores (monotone):
    # each pass removes all current row maxima (k-1 XLU reduces + selects).
    # (Optional v6e/v7x micro-opt: run these passes on a bf16 copy of s.)
    cur = s
    for _ in range(k - 1):
        row_max = jnp.max(cur, axis=-1, keepdims=True)
        cur = jnp.where(cur == row_max, -jnp.inf, cur)
    kth = jnp.max(cur, axis=-1, keepdims=True)

    # relu(sigmoid(x)) == sigmoid(x); sigmoid issues on the EUP while the
    # VPU/XLU handle the compare/select.
    out_ref[...] = jnp.where(s >= kth, jax.nn.sigmoid(s), 0.0).astype(out_ref.dtype)


# --------------------------------------------------------------------------
# Tiling / VMEM policy (generation-aware)
# --------------------------------------------------------------------------
def _round_up(x, m):
    return ((x + m - 1) // m) * m


def _round_down_mult8(x):
    return max(8, (x // 8) * 8)


def _vmem_plan():
    """Return (vmem_limit_bytes, per-step footprint budget)."""
    cap = 64 << 20  # conservative fallback == v7x per-TC capacity
    try:
        cap = int(pltpu.get_tpu_info().vmem_capacity_bytes)
    except Exception:
        pass
    if cap >= (96 << 20):          # v4 / v5e / v6e class: 128 MiB physical
        limit = 64 << 20
    else:                          # v7x class (64 MiB / TC) or smaller
        limit = min((cap * 3) // 4, 48 << 20)
    return limit, limit // 2


def _choose_tiles(B, Na, Nb_pad, D, budget_bytes):
    """Pick (bblk, tile_r) so the REAL per-step footprint fits the budget."""

    def step_bytes(bblk, tile_r):
        # double-buffered BlockSpec tiles (f32 in / f32 out) ...
        block = 2 * 4 * bblk * (tile_r * D + Nb_pad * D + tile_r * Nb_pad)
        # ... plus live in-kernel intermediates: bf16 ua/ub and ~3x f32
        # score-sized temps (s, cur, output value).
        inter = bblk * (2 * (tile_r + Nb_pad) * D + 3 * 4 * tile_r * Nb_pad)
        return block + inter

    if budget_bytes >= (24 << 20):
        cap_r = 1024               # v5e/v6e-sized budgets: big tiles
    elif budget_bytes >= (12 << 20):
        cap_r = 512
    else:
        cap_r = 256                # v7x / small-VMEM budgets
    # Full rows when small, else a multiple-of-8 cap; ragged edge handled by
    # pl.cdiv + block cropping (no collapsing to tile_r=8).
    tile_r = Na if Na <= cap_r else cap_r
    while tile_r > 8 and step_bytes(1, tile_r) > budget_bytes:
        tile_r = _round_down_mult8(tile_r // 2)

    bblk = 1
    while (bblk < B and B % (2 * bblk) == 0
           and step_bytes(2 * bblk, tile_r) <= budget_bytes):
        bblk *= 2
    return bblk, tile_r, step_bytes(bblk, tile_r)


# --------------------------------------------------------------------------
# Wrapper (forward pass)
# --------------------------------------------------------------------------
def dyn_graph(tensor_a, tensor_b, theta1_intra, theta2_intra,
              theta_a_inter, theta_b_inter, k_intra=5, k_inter=5,
              out_dtype=jnp.float32):
    B, Na, D = tensor_a.shape
    Bb, Nb, Db = tensor_b.shape
    assert B == Bb and D == Db
    f32 = jnp.float32

    # ---- intra adjacencies: provably identically zero (see header) --------
    # theta1_intra / theta2_intra / k_intra are unused because the expression
    # collapses to zero for any parameter values.
    A_intra_a = jnp.zeros((B, Na, Na), out_dtype)
    A_intra_b = jnp.zeros((B, Nb, Nb), out_dtype)

    theta_ab = (theta_a_inter.astype(f32) *
                theta_b_inter.astype(f32)).reshape(1, 1, D)
    k = max(1, min(k_inter, Nb))

    # ---- tiny-problem fast path: plain XLA, no pallas_call overhead -------
    if B * Na * Nb <= 4096 or Na < 8 or Nb < 8:
        ua = tensor_a.astype(f32) * theta_ab
        s = jnp.einsum('brd,bnd->brn', ua, tensor_b.astype(f32))
        kth = jax.lax.top_k(s, k)[0][..., -1:]
        A_inter = jnp.where(s >= kth, jax.nn.sigmoid(s), 0.0).astype(out_dtype)
        return A_intra_a, A_intra_b, A_inter

    # ---- inter adjacency: Pallas kernel ------------------------------------
    Nb_pad = _round_up(Nb, 128)                 # lane-dense output slab
    b_in = tensor_b
    if Nb_pad != Nb:
        b_in = jnp.pad(tensor_b, ((0, 0), (0, Nb_pad - Nb), (0, 0)))

    vmem_limit, budget = _vmem_plan()
    bblk, tile_r, step_footprint = _choose_tiles(B, Na, Nb_pad, D, budget)
    grid = (B // bblk, pl.cdiv(Na, tile_r))

    kernel = functools.partial(_inter_kernel, k, Nb)

    A_inter_pad = pl.pallas_call(
        kernel,
        out_shape=jax.ShapeDtypeStruct((B, Na, Nb_pad), out_dtype),
        grid_spec=pltpu.PrefetchScalarGridSpec(
            num_scalar_prefetch=0,
            grid=grid,
            in_specs=[
                pl.BlockSpec((1, 1, D), lambda bi, ri: (0, 0, 0)),
                pl.BlockSpec((bblk, tile_r, D), lambda bi, ri: (bi, ri, 0)),
                pl.BlockSpec((bblk, Nb_pad, D), lambda bi, ri: (bi, 0, 0)),
            ],
            out_specs=pl.BlockSpec((bblk, tile_r, Nb_pad),
                                   lambda bi, ri: (bi, ri, 0)),
        ),
        compiler_params=pltpu.CompilerParams(
            # batch-block axis megacore-parallel; row-tile axis sequential so
            # the b block (index_map constant in ri) is fetched once per core.
            dimension_semantics=("parallel", "arbitrary"),
            # only override the scoped default when the footprint needs it
            vmem_limit_bytes=vmem_limit if step_footprint > (12 << 20) else None,
        ),
    )(theta_ab, tensor_a, b_in)

    A_inter = A_inter_pad if Nb_pad == Nb else A_inter_pad[:, :, :Nb]
    return A_intra_a, A_intra_b, A_inter


# --------------------------------------------------------------------------
# Demo / self-check
# --------------------------------------------------------------------------
if __name__ == "__main__":
    B, Na, Nb, D = 2, 128, 128, 32
    k_intra = k_inter = 5

    key = jax.random.PRNGKey(0)
    k_a, k_b, k_t1, k_t2, k_ta, k_tb = jax.random.split(key, 6)

    tensor_a = jax.random.normal(k_a, (B, Na, D), jnp.float32)
    tensor_b = jax.random.normal(k_b, (B, Nb, D), jnp.float32)
    theta1_intra = jax.random.normal(k_t1, (D,), jnp.float32)
    theta2_intra = jax.random.normal(k_t2, (D,), jnp.float32)
    theta_a_inter = jax.random.normal(k_ta, (D,), jnp.float32)
    theta_b_inter = jax.random.normal(k_tb, (D,), jnp.float32)

    outs = dyn_graph(tensor_a, tensor_b, theta1_intra, theta2_intra,
                     theta_a_inter, theta_b_inter,
                     k_intra=k_intra, k_inter=k_inter)
    A_intra_a, A_intra_b, A_inter = jax.block_until_ready(outs)

    assert A_intra_a.shape == (B, Na, Na)
    assert A_intra_b.shape == (B, Nb, Nb)
    assert A_inter.shape == (B, Na, Nb)
    assert not bool(jnp.any(A_intra_a)) and not bool(jnp.any(A_intra_b))

    # Dense f32 reference sigmoid scores for value / count checks.
    s_ref = jax.nn.sigmoid(
        jnp.einsum('brd,bnd->brn',
                   tensor_a * (theta_a_inter * theta_b_inter), tensor_b))
    kept = A_inter > 0
    nnz = jnp.sum(kept.astype(jnp.int32), axis=-1)
    assert bool(jnp.all(nnz == min(k_inter, Nb)))
    max_err = jnp.max(jnp.where(kept, jnp.abs(A_inter - s_ref), 0.0))
    assert float(max_err) < 3e-2   # bf16-operand matmul tolerance

    # Tiny-shape fast path (plain XLA) sanity check.
    _, _, A_small = jax.block_until_ready(
        dyn_graph(tensor_a[:, :8], tensor_b[:, :8],
                  theta1_intra, theta2_intra, theta_a_inter, theta_b_inter,
                  k_intra=k_intra, k_inter=k_inter))
    assert A_small.shape == (B, 8, 8)
    nnz_small = jnp.sum((A_small > 0).astype(jnp.int32), axis=-1)
    assert bool(jnp.all(nnz_small == min(k_inter, 8)))

    print("KERNEL_OK")
</pallas_src>

<mosaic_0001>
module attributes {stable_mosaic.version = 11 : i64} {
  func.func @_inter_kernel(%arg0: i32, %arg1: i32, %arg2: memref<1x1x32xf32, #tpu.memory_space<vmem>>, %arg3: memref<2x128x32xf32, #tpu.memory_space<vmem>>, %arg4: memref<2x128x32xf32, #tpu.memory_space<vmem>>, %arg5: memref<2x128x128xf32, #tpu.memory_space<vmem>>) attributes {dimension_semantics = [#tpu.dimension_semantics<parallel>, #tpu.dimension_semantics<arbitrary>], iteration_bounds = array<i64: 1, 1>, scalar_prefetch = 0 : i64, scratch_operands = 0 : i64, tpu.core_type = #tpu.core_type<tc>, window_params = [{pipeline_mode = #tpu.pipeline_mode<synchronous>, transform_indices = @transform_0, window_bounds = array<i64: 1, 1, 32>}, {transform_indices = @transform_1, window_bounds = array<i64: 2, 128, 32>}, {transform_indices = @transform_2, window_bounds = array<i64: 2, 128, 32>}, {transform_indices = @transform_3, window_bounds = array<i64: 2, 128, 128>}]} {
    %c0 = arith.constant 0 : index
    %c0_0 = arith.constant 0 : index
    %c0_1 = arith.constant 0 : index
    %0 = vector.load %arg3[%c0, %c0_0, %c0_1] : memref<2x128x32xf32, #tpu.memory_space<vmem>>, vector<2x128x32xf32>
    %c0_2 = arith.constant 0 : index
    %c0_3 = arith.constant 0 : index
    %c0_4 = arith.constant 0 : index
    %1 = vector.load %arg2[%c0_2, %c0_3, %c0_4] : memref<1x1x32xf32, #tpu.memory_space<vmem>>, vector<1x1x32xf32>
    %2 = vector.broadcast %1 : vector<1x1x32xf32> to vector<2x128x32xf32>
    %3 = arith.mulf %0, %2 : vector<2x128x32xf32>
    %4 = arith.truncf %3 : vector<2x128x32xf32> to vector<2x128x32xbf16>
    %c0_5 = arith.constant 0 : index
    %c0_6 = arith.constant 0 : index
    %c0_7 = arith.constant 0 : index
    %5 = vector.load %arg4[%c0_5, %c0_6, %c0_7] : memref<2x128x32xf32, #tpu.memory_space<vmem>>, vector<2x128x32xf32>
    %6 = arith.truncf %5 : vector<2x128x32xf32> to vector<2x128x32xbf16>
    "tpu.trace_start"() <{level = 10 : i32, message = "brd,bnd->brn"}> : () -> ()
    %cst = arith.constant dense<0.000000e+00> : vector<2x128x128xf32>
    %7 = tpu.matmul %4, %6, %cst {dimension_numbers = #tpu.dot_dimension_numbers<[2], [2], [1], [1], [0, 0, 0, 1, 1, 1], [0], [0]>} : vector<2x128x32xbf16>, vector<2x128x32xbf16>, vector<2x128x128xf32> -> vector<2x128x128xf32>
    "tpu.trace_stop"() : () -> ()
    %cst_8 = arith.constant dense<0xFF800000> : vector<2x128xf32>
    %8 = vector.multi_reduction <maximumf>, %7, %cst_8 [2] : vector<2x128x128xf32> to vector<2x128xf32>
    %9 = vector.shape_cast %8 : vector<2x128xf32> to vector<2x128x1xf32>
    %10 = vector.broadcast %9 : vector<2x128x1xf32> to vector<2x128x128xf32>
    %11 = arith.cmpf oeq, %7, %10 : vector<2x128x128xf32>
    %cst_9 = arith.constant 0xFF800000 : f32
    %12 = vector.broadcast %cst_9 : f32 to vector<2x128x128xf32>
    %13 = arith.select %11, %12, %7 : vector<2x128x128xi1>, vector<2x128x128xf32>
    %cst_10 = arith.constant dense<0xFF800000> : vector<2x128xf32>
    %14 = vector.multi_reduction <maximumf>, %13, %cst_10 [2] : vector<2x128x128xf32> to vector<2x128xf32>
    %15 = vector.shape_cast %14 : vector<2x128xf32> to vector<2x128x1xf32>
    %16 = vector.broadcast %15 : vector<2x128x1xf32> to vector<2x128x128xf32>
    %17 = arith.cmpf oeq, %13, %16 : vector<2x128x128xf32>
    %cst_11 = arith.constant 0xFF800000 : f32
    %18 = vector.broadcast %cst_11 : f32 to vector<2x128x128xf32>
    %19 = arith.select %17, %18, %13 : vector<2x128x128xi1>, vector<2x128x128xf32>
    %cst_12 = arith.constant dense<0xFF800000> : vector<2x128xf32>
    %20 = vector.multi_reduction <maximumf>, %19, %cst_12 [2] : vector<2x128x128xf32> to vector<2x128xf32>
    %21 = vector.shape_cast %20 : vector<2x128xf32> to vector<2x128x1xf32>
    %22 = vector.broadcast %21 : vector<2x128x1xf32> to vector<2x128x128xf32>
    %23 = arith.cmpf oeq, %19, %22 : vector<2x128x128xf32>
    %cst_13 = arith.constant 0xFF800000 : f32
    %24 = vector.broadcast %cst_13 : f32 to vector<2x128x128xf32>
    %25 = arith.select %23, %24, %19 : vector<2x128x128xi1>, vector<2x128x128xf32>
    %cst_14 = arith.constant dense<0xFF800000> : vector<2x128xf32>
    %26 = vector.multi_reduction <maximumf>, %25, %cst_14 [2] : vector<2x128x128xf32> to vector<2x128xf32>
    %27 = vector.shape_cast %26 : vector<2x128xf32> to vector<2x128x1xf32>
    %28 = vector.broadcast %27 : vector<2x128x1xf32> to vector<2x128x128xf32>
    %29 = arith.cmpf oeq, %25, %28 : vector<2x128x128xf32>
    %cst_15 = arith.constant 0xFF800000 : f32
    %30 = vector.broadcast %cst_15 : f32 to vector<2x128x128xf32>
    %31 = arith.select %29, %30, %25 : vector<2x128x128xi1>, vector<2x128x128xf32>
    %cst_16 = arith.constant dense<0xFF800000> : vector<2x128xf32>
    %32 = vector.multi_reduction <maximumf>, %31, %cst_16 [2] : vector<2x128x128xf32> to vector<2x128xf32>
    %33 = vector.shape_cast %32 : vector<2x128xf32> to vector<2x128x1xf32>
    %34 = vector.broadcast %33 : vector<2x128x1xf32> to vector<2x128x128xf32>
    %35 = arith.cmpf oge, %7, %34 : vector<2x128x128xf32>
    %36 = arith.negf %7 : vector<2x128x128xf32>
    %37 = math.exp %36 : vector<2x128x128xf32>
    %cst_17 = arith.constant 1.000000e+00 : f32
    %38 = vector.broadcast %cst_17 : f32 to vector<2x128x128xf32>
    %39 = arith.addf %38, %37 : vector<2x128x128xf32>
    %40 = arith.divf %38, %39 : vector<2x128x128xf32>
    %cst_18 = arith.constant 0.000000e+00 : f32
    %41 = vector.broadcast %cst_18 : f32 to vector<2x128x128xf32>
    %42 = arith.select %35, %40, %41 : vector<2x128x128xi1>, vector<2x128x128xf32>
    %c0_19 = arith.constant 0 : index
    %c0_20 = arith.constant 0 : index
    %c0_21 = arith.constant 0 : index
    %43 = vector.load %arg5[%c0_19, %c0_20, %c0_21] : memref<2x128x128xf32, #tpu.memory_space<vmem>>, vector<2x128x128xf32>
    tpu.vector_store %arg5[%c0_19, %c0_20, %c0_21], %42 {strides = array<i32>} : memref<2x128x128xf32, #tpu.memory_space<vmem>>, vector<2x128x128xf32>,
    return
  }
  func.func @transform_0(%arg0: i32, %arg1: i32) -> (i32, i32, i32) {
    %c0_i32 = arith.constant 0 : i32
    %c0_i32_0 = arith.constant 0 : i32
    %c0_i32_1 = arith.constant 0 : i32
    %c0_i32_2 = arith.constant 0 : i32
    return %c0_i32, %c0_i32_0, %c0_i32_1 : i32, i32, i32
  }
  func.func @transform_1(%arg0: i32, %arg1: i32) -> (i32, i32, i32) {
    %c0_i32 = arith.constant 0 : i32
    %c0_i32_0 = arith.constant 0 : i32
    return %arg0, %arg1, %c0_i32 : i32, i32, i32
  }
  func.func @transform_2(%arg0: i32, %arg1: i32) -> (i32, i32, i32) {
    %c0_i32 = arith.constant 0 : i32
    %c0_i32_0 = arith.constant 0 : i32
    %c0_i32_1 = arith.constant 0 : i32
    return %arg0, %c0_i32, %c0_i32_0 : i32, i32, i32
  }
  func.func @transform_3(%arg0: i32, %arg1: i32) -> (i32, i32, i32) {
    %c0_i32 = arith.constant 0 : i32
    %c0_i32_0 = arith.constant 0 : i32
    return %arg0, %arg1, %c0_i32 : i32, i32, i32
  }
}

</mosaic_0001>

<bundles_post_ra>
// kernel: tpu_custom_call.1
= control target key start
LH: loop header
LB: loop body
LE: loop exit
PB: predicated region body
PF: predicated region fallthrough
CT: control target
= control target key end

     0   :  { %vm151_vm0 = vcmask 261120   ;;  %s2654_s0 = inlined_call_operand.vmem [shape: f32[1,1,32], index: 0, kind: input, shape index: {}]   ;;  %s2655_s1 = inlined_call_operand.vmem [shape: f32[2,128,32], index: 1, kind: input, shape index: {}]   ;;  %s2656_s2 = inlined_call_operand.vmem [shape: f32[2,128,32], index: 2, kind: input, shape index: {}]   ;;  %s2657_s3 = inlined_call_operand.hbm [shape: f32[2,128,128], index: 3, kind: output, shape index: {}]  }
   0x1   :  { %v103_v0 = vld [vmem:[%s2656_s2] sm:$0xff]  ;;  %v104_v1 = vld [vmem:[%s2656_s2 + $0x8] sm:$0xff]  ;;  %v105_v5 = vld [vmem:[%s2656_s2 + $0x10] sm:$0xff] }
   0x2   :  { %v119_v2 = vld [vmem:[%s2656_s2 + $0x80] sm:$0xff]  ;;  %v135_v3 = vpack.c.bf16 %v104_v1, %v103_v0  ;;  %v120_v4 = vld [vmem:[%s2656_s2 + $0x88] sm:$0xff]  ;;  %v106_v6 = vld [vmem:[%s2656_s2 + $0x18] sm:$0xff] }
   0x3   :  { %v143_v7 = vpack.c.bf16 %v120_v4, %v119_v2  ;;  %v136_v8 = vpack.c.bf16 %v106_v6, %v105_v5  ;;  %v121_v9 = vld [vmem:[%s2656_s2 + $0x90] sm:$0xff]  ;;  %v122_v10 = vld [vmem:[%s2656_s2 + $0x98] sm:$0xff]  ;;  %v107_v14 = vld [vmem:[%s2656_s2 + $0x20] sm:$0xff] }
   0x4   :  { %1467 = vmatprep.subr.msk.bf16.mxu0 %vm151_vm0, %v135_v3  ;;  %v177_v11 = vsel %vm151_vm0, %v135_v3, 0  ;;  %v144_v12 = vpack.c.bf16 %v122_v10, %v121_v9  ;;  %v108_v15 = vld [vmem:[%s2656_s2 + $0x28] sm:$0xff]  ;;  %v123_v16 = vld [vmem:[%s2656_s2 + $0xa0] sm:$0xff]  ;;  %v109_v31 = vld [vmem:[%s2656_s2 + $0x30] sm:$0xff] }
   0x5   :  { %1475 = vmatprep.subr.msk.bf16.mxu1 %vm151_vm0, %v143_v7  ;;  %1404 = vmatpush3.bf16.xpose.msra.mxu0 %v177_v11  ;;  %v322_v13 = vsel %vm151_vm0, %v143_v7, 0  ;;  %v124_v17 = vld [vmem:[%s2656_s2 + $0xa8] sm:$0xff]  ;;  %v180_v18 = vsel %vm151_vm0, %v136_v8, 0  ;;  %v137_v19 = vpack.c.bf16 %v108_v15, %v107_v14  ;;  %v16_v22 = vld [vmem:[%s2655_s1] sm:$0xff]  ;;  %v110_v32 = vld [vmem:[%s2656_s2 + $0x38] sm:$0xff] }
   0x6   :  { %1436 = vmatpush3.bf16.xpose.msra.mxu1 %v322_v13  ;;  %1468 = vmatprep.subr.msk.bf16.mxu0 %vm151_vm0, %v136_v8  ;;  %v325_v20 = vsel %vm151_vm0, %v144_v12, 0  ;;  %v145_v21 = vpack.c.bf16 %v124_v17, %v123_v16  ;;  %v17_v23 = vld [vmem:[%s2655_s1 + $0x8] sm:$0xff]  ;;  %v1714_v24 = vld [vmem:[%s2654_s0] ss:$0 sm:$0xff]  ;;  %v125_v34 = vld [vmem:[%s2656_s2 + $0xb0] sm:$0xff]  ;;  %v138_v38 = vpack.c.bf16 %v110_v32, %v109_v31 }
   0x7   :  { %1476 = vmatprep.subr.msk.bf16.mxu1 %vm151_vm0, %v144_v12  ;;  %v32_v25 = vld [vmem:[%s2655_s1 + $0x80] sm:$0xff]  ;;  %v55_v26 = vmul.f32 %v1714_v24, %v16_v22  ;;  %v56_v27 = vmul.f32 %v1714_v24, %v17_v23  ;;  %v33_v28 = vld [vmem:[%s2655_s1 + $0x88] sm:$0xff]  ;;  %v126_v35 = vld [vmem:[%s2656_s2 + $0xb8] sm:$0xff]  ;;  %v183_v37 = vsel %vm151_vm0, %v137_v19, 0 }
   0x8   :  { %v71_v29 = vmul.f32 %v1714_v24, %v32_v25  ;;  %v72_v30 = vmul.f32 %v1714_v24, %v33_v28  ;;  %v328_v39 = vsel %vm151_vm0, %v145_v21, 0  ;;  %v146_v40 = vpack.c.bf16 %v126_v35, %v125_v34 }
   0x9   :  { %v87_v33 = vpack.c.bf16 %v56_v27, %v55_v26 }
   0xa   :  { %v95_v36 = vpack.c.bf16 %v72_v30, %v71_v29 }
   0xb   :  { %1419 = vmatprep.mubr.msk.bf16.mxu0 %vm151_vm0, %v87_v33 }
   0xc   :  { %1451 = vmatprep.mubr.msk.bf16.mxu1 %vm151_vm0, %v95_v36 }
   0xd   :  { %1406 = vmatpush3.bf16.xpose.msra.mxu0 %v180_v18 }
   0xe   :  { %1438 = vmatpush3.bf16.xpose.msra.mxu1 %v325_v20  ;;  %1469 = vmatprep.subr.msk.bf16.mxu0 %vm151_vm0, %v137_v19 }
   0xf   :  { %1477 = vmatprep.subr.msk.bf16.mxu1 %vm151_vm0, %v145_v21 }
  0x15   :  { %1408 = vmatpush3.bf16.xpose.msra.mxu0 %v183_v37 }
  0x16   :  { %1440 = vmatpush3.bf16.xpose.msra.mxu1 %v328_v39  ;;  %1470 = vmatprep.subr.msk.bf16.mxu0 %vm151_vm0, %v138_v38 }
  0x17   :  { %8 = vsyncpa [#allocation3], 0  ;;  %1478 = vmatprep.subr.msk.bf16.mxu1 %vm151_vm0, %v146_v40  ;;  %v111_v41 = vld [vmem:[%s2656_s2 + $0x40] sm:$0xff]  ;;  %v112_v42 = vld [vmem:[%s2656_s2 + $0x48] sm:$0xff]  ;;  %v186_v45 = vsel %vm151_vm0, %v138_v38, 0  ;;  %v331_v47 = vsel %vm151_vm0, %v146_v40, 0 }
  0x18   :  { %v127_v43 = vld [vmem:[%s2656_s2 + $0xc0] sm:$0xff]  ;;  %v128_v44 = vld [vmem:[%s2656_s2 + $0xc8] sm:$0xff]  ;;  %v139_v46 = vpack.c.bf16 %v112_v42, %v111_v41  ;;  %v113_v49 = vld [vmem:[%s2656_s2 + $0x50] sm:$0xff] }
  0x19   :  { %v147_v48 = vpack.c.bf16 %v128_v44, %v127_v43  ;;  %v114_v50 = vld [vmem:[%s2656_s2 + $0x58] sm:$0xff]  ;;  %v129_v51 = vld [vmem:[%s2656_s2 + $0xd0] sm:$0xff]  ;;  %v115_v57 = vld [vmem:[%s2656_s2 + $0x60] sm:$0xff] }
  0x1a   :  { %v130_v52 = vld [vmem:[%s2656_s2 + $0xd8] sm:$0xff]  ;;  %v189_v53 = vsel %vm151_vm0, %v139_v46, 0  ;;  %v140_v54 = vpack.c.bf16 %v114_v50, %v113_v49  ;;  %v116_v58 = vld [vmem:[%s2656_s2 + $0x68] sm:$0xff]  ;;  %v131_v59 = vld [vmem:[%s2656_s2 + $0xe0] sm:$0xff] }
  0x1b   :  { %v334_v55 = vsel %vm151_vm0, %v147_v48, 0  ;;  %v148_v56 = vpack.c.bf16 %v130_v52, %v129_v51  ;;  %v132_v60 = vld [vmem:[%s2656_s2 + $0xe8] sm:$0xff]  ;;  %v141_v62 = vpack.c.bf16 %v116_v58, %v115_v57  ;;  %v117_v1 = vld [vmem:[%s2656_s2 + $0x70] sm:$0xff]  ;;  %v118_v2 = vld [vmem:[%s2656_s2 + $0x78] sm:$0xff] }
  0x1c   :  { %v192_v61 = vsel %vm151_vm0, %v140_v54, 0  ;;  %v149_v0 = vpack.c.bf16 %v132_v60, %v131_v59  ;;  %v133_v3 = vld [vmem:[%s2656_s2 + $0xf0] sm:$0xff]  ;;  %v134_v4 = vld [vmem:[%s2656_s2 + $0xf8] sm:$0xff]  ;;  %v142_v6 = vpack.c.bf16 %v118_v2, %v117_v1  ;;  %v20_v14 = vld [vmem:[%s2655_s1 + $0x20] sm:$0xff] }
  0x1d   :  { %1410 = vmatpush3.bf16.xpose.msra.mxu0 %v186_v45  ;;  %v337_v63 = vsel %vm151_vm0, %v148_v56, 0  ;;  %v195_v5 = vsel %vm151_vm0, %v141_v62, 0  ;;  %v150_v8 = vpack.c.bf16 %v134_v4, %v133_v3  ;;  %v18_v9 = vld [vmem:[%s2655_s1 + $0x10] sm:$0xff]  ;;  %v19_v10 = vld [vmem:[%s2655_s1 + $0x18] sm:$0xff]  ;;  %v21_v15 = vld [vmem:[%s2655_s1 + $0x28] sm:$0xff]  ;;  %v59_v23 = vmul.f32 %v1714_v24, %v20_v14 }
  0x1e   :  { %1442 = vmatpush3.bf16.xpose.msra.mxu1 %v331_v47  ;;  %1471 = vmatprep.subr.msk.bf16.mxu0 %vm151_vm0, %v139_v46  ;;  %v340_v7 = vsel %vm151_vm0, %v149_v0, 0  ;;  %v34_v11 = vld [vmem:[%s2655_s1 + $0x90] sm:$0xff]  ;;  %v198_v12 = vsel %vm151_vm0, %v142_v6, 0  ;;  %v35_v13 = vld [vmem:[%s2655_s1 + $0x98] sm:$0xff]  ;;  %v36_v17 = vld [vmem:[%s2655_s1 + $0xa0] sm:$0xff]  ;;  %v57_v19 = vmul.f32 %v1714_v24, %v18_v9  ;;  %v58_v20 = vmul.f32 %v1714_v24, %v19_v10 }
  0x1f   :  { %1479 = vmatprep.subr.msk.bf16.mxu1 %vm151_vm0, %v147_v48  ;;  %v343_v16 = vsel %vm151_vm0, %v150_v8, 0  ;;  %v37_v18 = vld [vmem:[%s2655_s1 + $0xa8] sm:$0xff]  ;;  %v73_v21 = vmul.f32 %v1714_v24, %v34_v11  ;;  %v74_v22 = vmul.f32 %v1714_v24, %v35_v13  ;;  %v60_v25 = vmul.f32 %v1714_v24, %v21_v15  ;;  %v22_v31 = vld [vmem:[%s2655_s1 + $0x30] sm:$0xff]  ;;  %v23_v32 = vld [vmem:[%s2655_s1 + $0x38] sm:$0xff] }
  0x20   :  { %v75_v26 = vmul.f32 %v1714_v24, %v36_v17  ;;  %v76_v27 = vmul.f32 %v1714_v24, %v37_v18  ;;  %v88_v28 = vpack.c.bf16 %v58_v20, %v57_v19  ;;  %v38_v33 = vld [vmem:[%s2655_s1 + $0xb0] sm:$0xff]  ;;  %v39_v35 = vld [vmem:[%s2655_s1 + $0xb8] sm:$0xff]  ;;  %v24_v36 = vld [vmem:[%s2655_s1 + $0x40] sm:$0xff]  ;;  %v61_v40 = vmul.f32 %v1714_v24, %v22_v31 }
  0x21   :  { %v96_v29 = vpack.c.bf16 %v74_v22, %v73_v21  ;;  %v89_v30 = vpack.c.bf16 %v60_v25, %v59_v23  ;;  %v25_v37 = vld [vmem:[%s2655_s1 + $0x48] sm:$0xff]  ;;  %v40_v38 = vld [vmem:[%s2655_s1 + $0xc0] sm:$0xff]  ;;  %v62_v41 = vmul.f32 %v1714_v24, %v23_v32  ;;  %v77_v42 = vmul.f32 %v1714_v24, %v38_v33  ;;  %v26_v51 = vld [vmem:[%s2655_s1 + $0x50] sm:$0xff] }
  0x22   :  { %v97_v34 = vpack.c.bf16 %v76_v27, %v75_v26  ;;  %v41_v39 = vld [vmem:[%s2655_s1 + $0xc8] sm:$0xff]  ;;  %v78_v43 = vmul.f32 %v1714_v24, %v39_v35  ;;  %v63_v44 = vmul.f32 %v1714_v24, %v24_v36  ;;  %v64_v45 = vmul.f32 %v1714_v24, %v25_v37  ;;  %v27_v52 = vld [vmem:[%s2655_s1 + $0x58] sm:$0xff]  ;;  %v44_v58 = vld [vmem:[%s2655_s1 + $0xe0] sm:$0xff] }
  0x23   :  { %v79_v46 = vmul.f32 %v1714_v24, %v40_v38  ;;  %v80_v47 = vmul.f32 %v1714_v24, %v41_v39  ;;  %v90_v48 = vpack.c.bf16 %v62_v41, %v61_v40  ;;  %v29_v57 = vld [vmem:[%s2655_s1 + $0x68] sm:$0xff]  ;;  %v65_v60 = vmul.f32 %v1714_v24, %v26_v51  ;;  %v46_v10 = vld [vmem:[%s2655_s1 + $0xf0] sm:$0xff]  ;;  %v47_v11 = vld [vmem:[%s2655_s1 + $0xf8] sm:$0xff] }
  0x24   :  { %v98_v49 = vpack.c.bf16 %v78_v43, %v77_v42  ;;  %v91_v50 = vpack.c.bf16 %v64_v45, %v63_v44  ;;  %v45_v59 = vld [vmem:[%s2655_s1 + $0xe8] sm:$0xff]  ;;  %v68_v1 = vmul.f32 %v1714_v24, %v29_v57  ;;  %v83_v2 = vmul.f32 %v1714_v24, %v44_v58 }
  0x25   :  { %1412 = vmatpush3.bf16.xpose.msra.mxu0 %v189_v53  ;;  %v42_v53 = vld [vmem:[%s2655_s1 + $0xd0] sm:$0xff]  ;;  %v84_v3 = vmul.f32 %v1714_v24, %v45_v59  ;;  %v85_v14 = vmul.f32 %v1714_v24, %v46_v10  ;;  %v86_v15 = vmul.f32 %v1714_v24, %v47_v11 }
  0x26   :  { %1444 = vmatpush3.bf16.xpose.msra.mxu1 %v334_v55  ;;  %1472 = vmatprep.subr.msk.bf16.mxu0 %vm151_vm0, %v140_v54  ;;  %v99_v54 = vpack.c.bf16 %v80_v47, %v79_v46  ;;  %v43_v55 = vld [vmem:[%s2655_s1 + $0xd8] sm:$0xff] }
  0x27   :  { %1480 = vmatprep.subr.msk.bf16.mxu1 %vm151_vm0, %v148_v56  ;;  %v28_v56 = vld [vmem:[%s2655_s1 + $0x60] sm:$0xff]  ;;  %v101_v9 = vpack.c.bf16 %v84_v3, %v83_v2  ;;  %v102_v17 = vpack.c.bf16 %v86_v15, %v85_v14 }
  0x2d   :  { %1414 = vmatpush3.bf16.xpose.msra.mxu0 %v192_v61  ;;  %v66_v61 = vmul.f32 %v1714_v24, %v27_v52 }
  0x2e   :  { %1446 = vmatpush3.bf16.xpose.msra.mxu1 %v337_v63  ;;  %1473 = vmatprep.subr.msk.bf16.mxu0 %vm151_vm0, %v141_v62  ;;  %v81_v62 = vmul.f32 %v1714_v24, %v42_v53  ;;  %v82_v63 = vmul.f32 %v1714_v24, %v43_v55 }
  0x2f   :  { %1481 = vmatprep.subr.msk.bf16.mxu1 %vm151_vm0, %v149_v0  ;;  %v67_v0 = vmul.f32 %v1714_v24, %v28_v56  ;;  %v92_v4 = vpack.c.bf16 %v66_v61, %v65_v60 }
  0x35   :  { %1416 = vmatpush3.bf16.xpose.msra.mxu0 %v195_v5  ;;  %v100_v5 = vpack.c.bf16 %v82_v63, %v81_v62 }
  0x36   :  { %1448 = vmatpush3.bf16.xpose.msra.mxu1 %v340_v7  ;;  %1474 = vmatprep.subr.msk.bf16.mxu0 %vm151_vm0, %v142_v6  ;;  %v93_v6 = vpack.c.bf16 %v68_v1, %v67_v0  ;;  %v30_v7 = vld [vmem:[%s2655_s1 + $0x70] sm:$0xff] }
  0x37   :  { %1482 = vmatprep.subr.msk.bf16.mxu1 %vm151_vm0, %v150_v8  ;;  %v31_v8 = vld [vmem:[%s2655_s1 + $0x78] sm:$0xff]  ;;  %s1638_s1 = smov [#allocation2]  }
  0x38   :  { %v70_v13 = vmul.f32 %v1714_v24, %v31_v8  ;;  %s1311_s28 = sshll.u32 %s1638_s1, 4  ;;  %s1312_s28 = int_to_ptr.vmem [resolvable:$true] %s1311_s28 }
  0x39   :  { %s1614_s29 = scalar_lea.vmem %s1312_s28, 4096  ;;  %p1619_p1 = scmp.lt.s32.totalorder %s1312_s28, %s1312_s28 }
  0x3a   :  { %p1615_p0 = scmp.ne.s32.totalorder %s1312_s28, %s1614_s29  ;;  %p1620_p2 = scmp.lt.s32.totalorder %s1614_s29, %s1614_s29 }
  0x3c   :  { %p1621_p3 = por %p1620_p2, %p1619_p1 }
  0x3d   :  { %1418 = vmatpush3.bf16.xpose.msra.mxu0 %v198_v12  ;;  %v69_v12 = vmul.f32 %v1714_v24, %v30_v7 }
  0x3e   :  { %1450 = vmatpush3.bf16.xpose.msra.mxu1 %v343_v16  ;;  %p1622_p4 = pnand %p1621_p3, %p1615_p0 }
  0x3f   :  { %v94_v16 = vpack.c.bf16 %v70_v13, %v69_v12 }
  0x44   :  { %1420 = vmatmul.mubr.msk.bf16.vlgmr.msra.gmra.mrb[0].mxu0 %vm151_vm0, %v88_v28 }
  0x45   :  { %1452 = vmatmul.mubr.msk.bf16.vlgmr.msra.gmra.mrb[0].mxu1 %vm151_vm0, %v96_v29  ;;  %1423 = vmatprep.mubr.msk.bf16.mxu0 %vm151_vm0, %v89_v30 }
  0x46   :  { %1455 = vmatprep.mubr.msk.bf16.mxu1 %vm151_vm0, %v97_v34 }
  0x4c   :  { %1424 = vmatmul.mubr.msk.bf16.gmra.mrb[4].mxu0 %vm151_vm0, %v90_v48 }
  0x4d   :  { %1456 = vmatmul.mubr.msk.bf16.gmra.mrb[4].mxu1 %vm151_vm0, %v98_v49  ;;  %1427 = vmatprep.mubr.msk.bf16.mxu0 %vm151_vm0, %v91_v50 }
  0x4e   :  { %1459 = vmatprep.mubr.msk.bf16.mxu1 %vm151_vm0, %v99_v54 }
  0x54   :  { %1428 = vmatmul.mubr.msk.bf16.gmra.mrb[8].mxu0 %vm151_vm0, %v92_v4 }
  0x55   :  { %1460 = vmatmul.mubr.msk.bf16.gmra.mrb[8].mxu1 %vm151_vm0, %v100_v5  ;;  %1431 = vmatprep.mubr.msk.bf16.mxu0 %vm151_vm0, %v93_v6 }
  0x56   :  { %1463 = vmatprep.mubr.msk.bf16.mxu1 %vm151_vm0, %v101_v9 }
  0x5c   :  { %1432 = vmatmul.mubr.msk.bf16.gmra.mrb[12].mxu0 %vm151_vm0, %v94_v16 }
  0x5d   :  { %1464 = vmatmul.mubr.msk.bf16.gmra.mrb[12].mxu1 %vm151_vm0, %v102_v17 }
 0x117   :  { %v1938_v18 = vpop.f32.mrb[0].mxu0 }
 0x118   :  { %v1940_v19 = vpop.f32.mrb[0].mxu1  ;;  %446 = vmax.xlane.f32.xlu1 %v1938_v18  ;;  %v1943_v20 = vpop.f32.mrb[1].mxu0 }
 0x119   :  { %478 = vmax.xlane.f32.xlu0 %v1940_v19  ;;  %v1946_v21 = vpop.f32.mrb[1].mxu1  ;;  %v1948_v24 = vpop.f32.mrb[2].mxu0 }
 0x11a   :  { %v1950_v22 = vpop.f32.mrb[2].mxu1  ;;  %v1952_v23 = vpop.f32.mrb[3].mxu0 }
 0x11b   :  { %v1954_v25 = vpop.f32.mrb[3].mxu1 }
 0x11c   :  { %448 = vmax.xlane.f32.xlu1 %v1948_v24 }
 0x11d   :  { %442 = vmax.xlane.f32.xlu0 %v1943_v20 }
 0x11f   :  { %v1958_v26 = vpop.f32.mrb[4].mxu0 }
 0x120   :  { %480 = vmax.xlane.f32.xlu1 %v1950_v22  ;;  %v1961_v27 = vpop.f32.mrb[5].mxu0  ;;  %v1963_v28 = vpop.f32.mrb[4].mxu1 }
 0x121   :  { %474 = vmax.xlane.f32.xlu0 %v1946_v21  ;;  %v1966_v29 = vpop.f32.mrb[6].mxu0  ;;  %v1968_v30 = vpop.f32.mrb[5].mxu1 }
 0x122   :  { %v1970_v31 = vpop.f32.mrb[7].mxu0  ;;  %v1972_v32 = vpop.f32.mrb[6].mxu1 }
 0x123   :  { %v1974_v33 = vpop.f32.mrb[7].mxu1 }
 0x124   :  { %476 = vmax.xlane.f32.xlu1 %v1954_v25 }
 0x125   :  { %444 = vmax.xlane.f32.xlu0 %v1952_v23 }
 0x127   :  { %v1978_v34 = vpop.f32.mrb[8].mxu0 }
 0x128   :  { %456 = vmax.xlane.f32.xlu1 %v1966_v29  ;;  %v1981_v35 = vpop.f32.mrb[9].mxu0  ;;  %v1983_v36 = vpop.f32.mrb[8].mxu1 }
 0x129   :  { %454 = vmax.xlane.f32.xlu0 %v1958_v26  ;;  %v1986_v37 = vpop.f32.mrb[10].mxu0  ;;  %v1990_v39 = vpop.f32.mrb[9].mxu1 }
 0x12a   :  { %v1988_v38 = vpop.f32.mrb[11].mxu0  ;;  %v1992_v40 = vpop.f32.mrb[10].mxu1 }
 0x12b   :  { %v1995_v41 = vpop.f32.mrb[11].mxu1 }
 0x12c   :  { %488 = vmax.xlane.f32.xlu1 %v1972_v32 }
 0x12d   :  { %486 = vmax.xlane.f32.xlu0 %v1963_v28 }
 0x12f   :  { %v1998_v42 = vpop.f32.mrb[12].mxu0 }
 0x130   :  { %2674 = vst [vmem:[#allocation5_spill] sm:$0xff] %v1998_v42  ;;  %452 = vmax.xlane.f32.xlu1 %v1970_v31  ;;  %v2001_v43 = vpop.f32.mrb[13].mxu0  ;;  %v2003_v44 = vpop.f32.mrb[12].mxu1 }
 0x131   :  { %2675 = vst [vmem:[#allocation6_spill] sm:$0xff] %v2001_v43  ;;  %2676 = vst [vmem:[#allocation7_spill] sm:$0xff] %v2003_v44  ;;  %450 = vmax.xlane.f32.xlu0 %v1961_v27  ;;  %v2006_v45 = vpop.f32.mrb[14].mxu0  ;;  %v2010_v47 = vpop.f32.mrb[13].mxu1 }
 0x132   :  { %2677 = vst [vmem:[#allocation8_spill] sm:$0xff] %v2006_v45  ;;  %v2008_v46 = vpop.f32.mrb[15].mxu0  ;;  %2679 = vst [vmem:[#allocation10_spill] sm:$0xff] %v2010_v47  ;;  %v2012_v48 = vpop.f32.mrb[14].mxu1 }
 0x133   :  { %2678 = vst [vmem:[#allocation9_spill] sm:$0xff] %v2008_v46  ;;  %2680 = vst [vmem:[#allocation11_spill] sm:$0xff] %v2012_v48  ;;  %v2015_v49 = vpop.f32.mrb[15].mxu1 }
 0x134   :  { %484 = vmax.xlane.f32.xlu1 %v1974_v33  ;;  %2681 = vst [vmem:[#allocation12_spill] sm:$0xff] %v2015_v49 }
 0x135   :  { %482 = vmax.xlane.f32.xlu0 %v1968_v30 }
 0x138   :  { %464 = vmax.xlane.f32.xlu1 %v1986_v37 }
 0x139   :  { %462 = vmax.xlane.f32.xlu0 %v1978_v34 }
 0x13c   :  { %496 = vmax.xlane.f32.xlu1 %v1992_v40 }
 0x13d   :  { %494 = vmax.xlane.f32.xlu0 %v1983_v36 }
 0x140   :  { %460 = vmax.xlane.f32.xlu1 %v1988_v38 }
 0x141   :  { %458 = vmax.xlane.f32.xlu0 %v1981_v35 }
 0x144   :  { %492 = vmax.xlane.f32.xlu1 %v1995_v41 }
 0x145   :  { %490 = vmax.xlane.f32.xlu0 %v1990_v39 }
 0x148   :  { %472 = vmax.xlane.f32.xlu1 %v2006_v45 }
 0x149   :  { %470 = vmax.xlane.f32.xlu0 %v1998_v42 }
 0x14c   :  { %468 = vmax.xlane.f32.xlu1 %v2008_v46 }
 0x14d   :  { %466 = vmax.xlane.f32.xlu0 %v2001_v43 }
 0x150   :  { %500 = vmax.xlane.f32.xlu1 %v2015_v49 }
 0x151   :  { %498 = vmax.xlane.f32.xlu0 %v2010_v47 }
 0x154   :  { %504 = vmax.xlane.f32.xlu1 %v2012_v48 }
 0x155   :  { %502 = vmax.xlane.f32.xlu0 %v2003_v44 }
 0x1a5   :  { %v447_v50 = vpop.xlane.xlu1 %446 }
 0x1a6   :  { %v479_v51 = vpop.xlane.xlu0 %478  ;;  %vm508_vm1 = vcmp.eq.f32.partialorder %v1938_v18, %v447_v50 }
 0x1a7   :  { %v2036_v52 = vsel %vm508_vm1, -inf, %v1938_v18  ;;  %vm524_vm2 = vcmp.eq.f32.partialorder %v1940_v19, %v479_v51 }
 0x1a8   :  { %574 = vmax.xlane.f32.xlu0 %v2036_v52  ;;  %v2042_v55 = vsel %vm524_vm2, -inf, %v1940_v19 }
 0x1a9   :  { %v449_v53 = vpop.xlane.xlu1 %448 }
 0x1aa   :  { %v443_v54 = vpop.xlane.xlu0 %442  ;;  %vm509_vm3 = vcmp.eq.f32.partialorder %v1948_v24, %v449_v53 }
 0x1ab   :  { %v2045_v56 = vsel %vm509_vm3, -inf, %v1948_v24  ;;  %vm506_vm4 = vcmp.eq.f32.partialorder %v1943_v20, %v443_v54 }
 0x1ac   :  { %606 = vmax.xlane.f32.xlu0 %v2042_v55  ;;  %576 = vmax.xlane.f32.xlu1 %v2045_v56  ;;  %v2052_v59 = vsel %vm506_vm4, -inf, %v1943_v20 }
 0x1ad   :  { %v481_v57 = vpop.xlane.xlu1 %480 }
 0x1ae   :  { %v475_v58 = vpop.xlane.xlu0 %474  ;;  %vm525_vm5 = vcmp.eq.f32.partialorder %v1950_v22, %v481_v57 }
 0x1af   :  { %v2055_v60 = vsel %vm525_vm5, -inf, %v1950_v22  ;;  %vm522_vm6 = vcmp.eq.f32.partialorder %v1946_v21, %v475_v58 }
 0x1b0   :  { %570 = vmax.xlane.f32.xlu0 %v2052_v59  ;;  %608 = vmax.xlane.f32.xlu1 %v2055_v60  ;;  %v2062_v63 = vsel %vm522_vm6, -inf, %v1946_v21 }
 0x1b1   :  { %v477_v61 = vpop.xlane.xlu1 %476 }
 0x1b2   :  { %v445_v62 = vpop.xlane.xlu0 %444  ;;  %vm523_vm8 = vcmp.eq.f32.partialorder %v1954_v25, %v477_v61 }
 0x1b3   :  { %vm507_vm7 = vcmp.eq.f32.partialorder %v1952_v23, %v445_v62  ;;  %v2075_v4 = vsel %vm523_vm8, -inf, %v1954_v25 }
 0x1b4   :  { %602 = vmax.xlane.f32.xlu0 %v2062_v63  ;;  %v2066_v0 = vsel %vm507_vm7, -inf, %v1952_v23 }
 0x1b5   :  { %572 = vmax.xlane.f32.xlu1 %v2066_v0  ;;  %v457_v1 = vpop.xlane.xlu1 %456 }
 0x1b6   :  { %v455_v2 = vpop.xlane.xlu0 %454  ;;  %vm513_vm10 = vcmp.eq.f32.partialorder %v1966_v29, %v457_v1 }
 0x1b7   :  { %vm512_vm9 = vcmp.eq.f32.partialorder %v1958_v26, %v455_v2  ;;  %v2085_v8 = vsel %vm513_vm10, -inf, %v1966_v29 }
 0x1b8   :  { %v2072_v3 = vsel %vm512_vm9, -inf, %v1958_v26 }
 0x1b9   :  { %582 = vmax.xlane.f32.xlu0 %v2072_v3  ;;  %604 = vmax.xlane.f32.xlu1 %v2075_v4  ;;  %v489_v5 = vpop.xlane.xlu1 %488 }
 0x1ba   :  { %v487_v6 = vpop.xlane.xlu0 %486  ;;  %vm529_vm12 = vcmp.eq.f32.partialorder %v1972_v32, %v489_v5 }
 0x1bb   :  { %vm528_vm11 = vcmp.eq.f32.partialorder %v1963_v28, %v487_v6  ;;  %v2095_v12 = vsel %vm529_vm12, -inf, %v1972_v32 }
 0x1bc   :  { %v2082_v7 = vsel %vm528_vm11, -inf, %v1963_v28 }
 0x1bd   :  { %614 = vmax.xlane.f32.xlu0 %v2082_v7  ;;  %584 = vmax.xlane.f32.xlu1 %v2085_v8  ;;  %v453_v9 = vpop.xlane.xlu1 %452 }
 0x1be   :  { %v451_v10 = vpop.xlane.xlu0 %450  ;;  %vm511_vm14 = vcmp.eq.f32.partialorder %v1970_v31, %v453_v9 }
 0x1bf   :  { %vm510_vm13 = vcmp.eq.f32.partialorder %v1961_v27, %v451_v10  ;;  %v2105_v16 = vsel %vm511_vm14, -inf, %v1970_v31 }
 0x1c0   :  { %v2092_v11 = vsel %vm510_vm13, -inf, %v1961_v27 }
 0x1c1   :  { %578 = vmax.xlane.f32.xlu0 %v2092_v11  ;;  %616 = vmax.xlane.f32.xlu1 %v2095_v12  ;;  %v485_v13 = vpop.xlane.xlu1 %484 }
 0x1c2   :  { %v483_v14 = vpop.xlane.xlu0 %482  ;;  %vm527_vm0 = vcmp.eq.f32.partialorder %v1974_v33, %v485_v13 }
 0x1c3   :  { %vm526_vm15 = vcmp.eq.f32.partialorder %v1968_v30, %v483_v14  ;;  %v2115_v53 = vsel %vm527_vm0, -inf, %v1974_v33 }
 0x1c4   :  { %v2102_v15 = vsel %vm526_vm15, -inf, %v1968_v30 }
 0x1c5   :  { %610 = vmax.xlane.f32.xlu0 %v2102_v15  ;;  %580 = vmax.xlane.f32.xlu1 %v2105_v16  ;;  %v465_v17 = vpop.xlane.xlu1 %464 }
 0x1c6   :  { %v463_v50 = vpop.xlane.xlu0 %462  ;;  %vm517_vm2 = vcmp.eq.f32.partialorder %v1986_v37, %v465_v17 }
 0x1c7   :  { %vm516_vm1 = vcmp.eq.f32.partialorder %v1978_v34, %v463_v50  ;;  %v2125_v61 = vsel %vm517_vm2, -inf, %v1986_v37 }
 0x1c8   :  { %v2112_v51 = vsel %vm516_vm1, -inf, %v1978_v34 }
 0x1c9   :  { %590 = vmax.xlane.f32.xlu0 %v2112_v51  ;;  %612 = vmax.xlane.f32.xlu1 %v2115_v53  ;;  %v497_v54 = vpop.xlane.xlu1 %496 }
 0x1ca   :  { %v495_v57 = vpop.xlane.xlu0 %494  ;;  %vm533_vm4 = vcmp.eq.f32.partialorder %v1992_v40, %v497_v54 }
 0x1cb   :  { %vm532_vm3 = vcmp.eq.f32.partialorder %v1983_v36, %v495_v57  ;;  %v2135_v5 = vsel %vm533_vm4, -inf, %v1992_v40 }
 0x1cc   :  { %v2122_v58 = vsel %vm532_vm3, -inf, %v1983_v36 }
 0x1cd   :  { %622 = vmax.xlane.f32.xlu0 %v2122_v58  ;;  %592 = vmax.xlane.f32.xlu1 %v2125_v61  ;;  %v461_v62 = vpop.xlane.xlu1 %460 }
 0x1ce   :  { %v459_v1 = vpop.xlane.xlu0 %458  ;;  %vm515_vm6 = vcmp.eq.f32.partialorder %v1988_v38, %v461_v62 }
 0x1cf   :  { %vm514_vm5 = vcmp.eq.f32.partialorder %v1981_v35, %v459_v1  ;;  %v2145_v13 = vsel %vm515_vm6, -inf, %v1988_v38 }
 0x1d0   :  { %v2132_v2 = vsel %vm514_vm5, -inf, %v1981_v35 }
 0x1d1   :  { %586 = vmax.xlane.f32.xlu0 %v2132_v2  ;;  %624 = vmax.xlane.f32.xlu1 %v2135_v5  ;;  %v493_v6 = vpop.xlane.xlu1 %492 }
 0x1d2   :  { %v491_v9 = vpop.xlane.xlu0 %490  ;;  %vm531_vm8 = vcmp.eq.f32.partialorder %v1995_v41, %v493_v6 }
 0x1d3   :  { %vm530_vm7 = vcmp.eq.f32.partialorder %v1990_v39, %v491_v9  ;;  %v2155_v54 = vsel %vm531_vm8, -inf, %v1995_v41 }
 0x1d4   :  { %v2142_v10 = vsel %vm530_vm7, -inf, %v1990_v39 }
 0x1d5   :  { %618 = vmax.xlane.f32.xlu0 %v2142_v10  ;;  %588 = vmax.xlane.f32.xlu1 %v2145_v13  ;;  %v473_v14 = vpop.xlane.xlu1 %472 }
 0x1d6   :  { %v471_v17 = vpop.xlane.xlu0 %470  ;;  %vm521_vm10 = vcmp.eq.f32.partialorder %v2006_v45, %v473_v14 }
 0x1d7   :  { %vm520_vm9 = vcmp.eq.f32.partialorder %v1998_v42, %v471_v17  ;;  %v2165_v6 = vsel %vm521_vm10, -inf, %v2006_v45 }
 0x1d8   :  { %v2152_v50 = vsel %vm520_vm9, -inf, %v1998_v42 }
 0x1d9   :  { %598 = vmax.xlane.f32.xlu0 %v2152_v50  ;;  %620 = vmax.xlane.f32.xlu1 %v2155_v54  ;;  %v469_v57 = vpop.xlane.xlu1 %468 }
 0x1da   :  { %v467_v62 = vpop.xlane.xlu0 %466  ;;  %vm519_vm12 = vcmp.eq.f32.partialorder %v2008_v46, %v469_v57 }
 0x1db   :  { %vm518_vm11 = vcmp.eq.f32.partialorder %v2001_v43, %v467_v62  ;;  %v2175_v62 = vsel %vm519_vm12, -inf, %v2008_v46 }
 0x1dc   :  { %v2162_v1 = vsel %vm518_vm11, -inf, %v2001_v43 }
 0x1dd   :  { %594 = vmax.xlane.f32.xlu0 %v2162_v1  ;;  %600 = vmax.xlane.f32.xlu1 %v2165_v6  ;;  %v501_v9 = vpop.xlane.xlu1 %500 }
 0x1de   :  { %v499_v14 = vpop.xlane.xlu0 %498  ;;  %vm535_vm14 = vcmp.eq.f32.partialorder %v2015_v49, %v501_v9 }
 0x1df   :  { %vm534_vm13 = vcmp.eq.f32.partialorder %v2010_v47, %v499_v14  ;;  %v2185_v14 = vsel %vm535_vm14, -inf, %v2015_v49 }
 0x1e0   :  { %v2172_v17 = vsel %vm534_vm13, -inf, %v2010_v47 }
 0x1e1   :  { %626 = vmax.xlane.f32.xlu0 %v2172_v17  ;;  %596 = vmax.xlane.f32.xlu1 %v2175_v62  ;;  %v505_v45 = vpop.xlane.xlu1 %504 }
 0x1e2   :  { %v503_v57 = vpop.xlane.xlu0 %502  ;;  %vm537_vm0 = vcmp.eq.f32.partialorder %v2012_v48, %v505_v45 }
 0x1e3   :  { %vm536_vm15 = vcmp.eq.f32.partialorder %v2003_v44, %v503_v57  ;;  %v2191_v9 = vsel %vm537_vm0, -inf, %v2012_v48 }
 0x1e4   :  { %v2182_v43 = vsel %vm536_vm15, -inf, %v2003_v44 }
 0x1e5   :  { %630 = vmax.xlane.f32.xlu0 %v2182_v43  ;;  %628 = vmax.xlane.f32.xlu1 %v2185_v14 }
 0x1e9   :  { %632 = vmax.xlane.f32.xlu1 %v2191_v9 }
 0x235   :  { %v575_v47 = vpop.xlane.xlu0 %574 }
 0x236   :  { %vm636_vm1 = vcmp.eq.f32.partialorder %v2036_v52, %v575_v47 }
 0x237   :  { %v2196_v57 = vsel %vm636_vm1, -inf, %v2036_v52 }
 0x238   :  { %702 = vmax.xlane.f32.xlu0 %v2196_v57 }
 0x239   :  { %v607_v49 = vpop.xlane.xlu0 %606  ;;  %v577_v44 = vpop.xlane.xlu1 %576 }
 0x23a   :  { %vm652_vm2 = vcmp.eq.f32.partialorder %v2042_v55, %v607_v49  ;;  %vm637_vm3 = vcmp.eq.f32.partialorder %v2045_v56, %v577_v44 }
 0x23b   :  { %v2202_v45 = vsel %vm652_vm2, -inf, %v2042_v55  ;;  %v2205_v48 = vsel %vm637_vm3, -inf, %v2045_v56 }
 0x23c   :  { %734 = vmax.xlane.f32.xlu0 %v2202_v45  ;;  %704 = vmax.xlane.f32.xlu1 %v2205_v48 }
 0x23d   :  { %v571_v47 = vpop.xlane.xlu0 %570  ;;  %v609_v52 = vpop.xlane.xlu1 %608 }
 0x23e   :  { %vm634_vm4 = vcmp.eq.f32.partialorder %v2052_v59, %v571_v47  ;;  %vm653_vm5 = vcmp.eq.f32.partialorder %v2055_v60, %v609_v52 }
 0x23f   :  { %v2212_v49 = vsel %vm634_vm4, -inf, %v2052_v59  ;;  %v2215_v44 = vsel %vm653_vm5, -inf, %v2055_v60 }
 0x240   :  { %698 = vmax.xlane.f32.xlu0 %v2212_v49  ;;  %736 = vmax.xlane.f32.xlu1 %v2215_v44 }
 0x241   :  { %v603_v55 = vpop.xlane.xlu0 %602 }
 0x242   :  { %vm650_vm6 = vcmp.eq.f32.partialorder %v2062_v63, %v603_v55  ;;  %v573_v56 = vpop.xlane.xlu1 %572 }
 0x243   :  { %vm635_vm7 = vcmp.eq.f32.partialorder %v2066_v0, %v573_v56  ;;  %v2222_v47 = vsel %vm650_vm6, -inf, %v2062_v63 }
 0x244   :  { %730 = vmax.xlane.f32.xlu0 %v2222_v47  ;;  %v2226_v59 = vsel %vm635_vm7, -inf, %v2066_v0 }
 0x245   :  { %700 = vmax.xlane.f32.xlu1 %v2226_v59 }
 0x246   :  { %v583_v60 = vpop.xlane.xlu0 %582  ;;  %v605_v52 = vpop.xlane.xlu1 %604 }
 0x247   :  { %vm640_vm8 = vcmp.eq.f32.partialorder %v2072_v3, %v583_v60  ;;  %vm651_vm9 = vcmp.eq.f32.partialorder %v2075_v4, %v605_v52 }
 0x248   :  { %v2232_v55 = vsel %vm640_vm8, -inf, %v2072_v3  ;;  %v2235_v56 = vsel %vm651_vm9, -inf, %v2075_v4 }
 0x249   :  { %710 = vmax.xlane.f32.xlu0 %v2232_v55  ;;  %732 = vmax.xlane.f32.xlu1 %v2235_v56 }
 0x24a   :  { %v615_v63 = vpop.xlane.xlu0 %614  ;;  %v585_v0 = vpop.xlane.xlu1 %584 }
 0x24b   :  { %vm656_vm10 = vcmp.eq.f32.partialorder %v2082_v7, %v615_v63  ;;  %vm641_vm11 = vcmp.eq.f32.partialorder %v2085_v8, %v585_v0 }
 0x24c   :  { %v2242_v60 = vsel %vm656_vm10, -inf, %v2082_v7  ;;  %v2245_v52 = vsel %vm641_vm11, -inf, %v2085_v8 }
 0x24d   :  { %742 = vmax.xlane.f32.xlu0 %v2242_v60  ;;  %712 = vmax.xlane.f32.xlu1 %v2245_v52 }
 0x24e   :  { %v579_v3 = vpop.xlane.xlu0 %578  ;;  %v617_v4 = vpop.xlane.xlu1 %616 }
 0x24f   :  { %vm638_vm12 = vcmp.eq.f32.partialorder %v2092_v11, %v579_v3  ;;  %vm657_vm13 = vcmp.eq.f32.partialorder %v2095_v12, %v617_v4 }
 0x250   :  { %v2252_v63 = vsel %vm638_vm12, -inf, %v2092_v11  ;;  %v2255_v0 = vsel %vm657_vm13, -inf, %v2095_v12 }
 0x251   :  { %706 = vmax.xlane.f32.xlu0 %v2252_v63  ;;  %744 = vmax.xlane.f32.xlu1 %v2255_v0 }
 0x252   :  { %v611_v7 = vpop.xlane.xlu0 %610  ;;  %v581_v8 = vpop.xlane.xlu1 %580 }
 0x253   :  { %vm654_vm14 = vcmp.eq.f32.partialorder %v2102_v15, %v611_v7  ;;  %vm639_vm15 = vcmp.eq.f32.partialorder %v2105_v16, %v581_v8 }
 0x254   :  { %v2262_v3 = vsel %vm654_vm14, -inf, %v2102_v15  ;;  %v2265_v4 = vsel %vm639_vm15, -inf, %v2105_v16 }
 0x255   :  { %738 = vmax.xlane.f32.xlu0 %v2262_v3  ;;  %708 = vmax.xlane.f32.xlu1 %v2265_v4 }
 0x256   :  { %v591_v11 = vpop.xlane.xlu0 %590  ;;  %v613_v12 = vpop.xlane.xlu1 %612 }
 0x257   :  { %vm644_vm0 = vcmp.eq.f32.partialorder %v2112_v51, %v591_v11  ;;  %vm655_vm1 = vcmp.eq.f32.partialorder %v2115_v53, %v613_v12 }
 0x258   :  { %v2272_v7 = vsel %vm644_vm0, -inf, %v2112_v51  ;;  %v2275_v8 = vsel %vm655_vm1, -inf, %v2115_v53 }
 0x259   :  { %718 = vmax.xlane.f32.xlu0 %v2272_v7  ;;  %740 = vmax.xlane.f32.xlu1 %v2275_v8 }
 0x25a   :  { %v623_v15 = vpop.xlane.xlu0 %622  ;;  %v593_v16 = vpop.xlane.xlu1 %592 }
 0x25b   :  { %vm660_vm2 = vcmp.eq.f32.partialorder %v2122_v58, %v623_v15  ;;  %vm645_vm3 = vcmp.eq.f32.partialorder %v2125_v61, %v593_v16 }
 0x25c   :  { %v2282_v11 = vsel %vm660_vm2, -inf, %v2122_v58  ;;  %v2285_v12 = vsel %vm645_vm3, -inf, %v2125_v61 }
 0x25d   :  { %750 = vmax.xlane.f32.xlu0 %v2282_v11  ;;  %720 = vmax.xlane.f32.xlu1 %v2285_v12 }
 0x25e   :  { %v587_v51 = vpop.xlane.xlu0 %586  ;;  %v625_v53 = vpop.xlane.xlu1 %624 }
 0x25f   :  { %vm642_vm4 = vcmp.eq.f32.partialorder %v2132_v2, %v587_v51  ;;  %vm661_vm5 = vcmp.eq.f32.partialorder %v2135_v5, %v625_v53 }
 0x260   :  { %v2292_v15 = vsel %vm642_vm4, -inf, %v2132_v2  ;;  %v2295_v16 = vsel %vm661_vm5, -inf, %v2135_v5 }
 0x261   :  { %714 = vmax.xlane.f32.xlu0 %v2292_v15  ;;  %752 = vmax.xlane.f32.xlu1 %v2295_v16 }
 0x262   :  { %v619_v58 = vpop.xlane.xlu0 %618  ;;  %v589_v61 = vpop.xlane.xlu1 %588 }
 0x263   :  { %vm658_vm6 = vcmp.eq.f32.partialorder %v2142_v10, %v619_v58  ;;  %vm643_vm7 = vcmp.eq.f32.partialorder %v2145_v13, %v589_v61 }
 0x264   :  { %v2302_v51 = vsel %vm658_vm6, -inf, %v2142_v10  ;;  %v2305_v53 = vsel %vm643_vm7, -inf, %v2145_v13 }
 0x265   :  { %746 = vmax.xlane.f32.xlu0 %v2302_v51  ;;  %716 = vmax.xlane.f32.xlu1 %v2305_v53 }
 0x266   :  { %v599_v2 = vpop.xlane.xlu0 %598  ;;  %v621_v5 = vpop.xlane.xlu1 %620 }
 0x267   :  { %vm648_vm8 = vcmp.eq.f32.partialorder %v2152_v50, %v599_v2  ;;  %vm659_vm9 = vcmp.eq.f32.partialorder %v2155_v54, %v621_v5 }
 0x268   :  { %v2312_v58 = vsel %vm648_vm8, -inf, %v2152_v50  ;;  %v2315_v61 = vsel %vm659_vm9, -inf, %v2155_v54 }
 0x269   :  { %726 = vmax.xlane.f32.xlu0 %v2312_v58  ;;  %748 = vmax.xlane.f32.xlu1 %v2315_v61 }
 0x26a   :  { %v595_v10 = vpop.xlane.xlu0 %594  ;;  %v601_v13 = vpop.xlane.xlu1 %600 }
 0x26b   :  { %vm646_vm10 = vcmp.eq.f32.partialorder %v2162_v1, %v595_v10  ;;  %vm649_vm11 = vcmp.eq.f32.partialorder %v2165_v6, %v601_v13 }
 0x26c   :  { %v2322_v2 = vsel %vm646_vm10, -inf, %v2162_v1  ;;  %v2325_v5 = vsel %vm649_vm11, -inf, %v2165_v6 }
 0x26d   :  { %722 = vmax.xlane.f32.xlu0 %v2322_v2  ;;  %728 = vmax.xlane.f32.xlu1 %v2325_v5 }
 0x26e   :  { %v627_v50 = vpop.xlane.xlu0 %626  ;;  %v597_v54 = vpop.xlane.xlu1 %596 }
 0x26f   :  { %vm662_vm12 = vcmp.eq.f32.partialorder %v2172_v17, %v627_v50  ;;  %vm647_vm13 = vcmp.eq.f32.partialorder %v2175_v62, %v597_v54 }
 0x270   :  { %v2332_v10 = vsel %vm662_vm12, -inf, %v2172_v17  ;;  %v2335_v13 = vsel %vm647_vm13, -inf, %v2175_v62 }
 0x271   :  { %754 = vmax.xlane.f32.xlu0 %v2332_v10  ;;  %724 = vmax.xlane.f32.xlu1 %v2335_v13 }
 0x272   :  { %v631_v1 = vpop.xlane.xlu0 %630  ;;  %v629_v6 = vpop.xlane.xlu1 %628 }
 0x273   :  { %vm664_vm14 = vcmp.eq.f32.partialorder %v2182_v43, %v631_v1  ;;  %vm663_vm15 = vcmp.eq.f32.partialorder %v2185_v14, %v629_v6 }
 0x274   :  { %v2342_v50 = vsel %vm664_vm14, -inf, %v2182_v43  ;;  %v2345_v54 = vsel %vm663_vm15, -inf, %v2185_v14 }
 0x275   :  { %758 = vmax.xlane.f32.xlu0 %v2342_v50  ;;  %756 = vmax.xlane.f32.xlu1 %v2345_v54 }
 0x276   :  { %v633_v17 = vpop.xlane.xlu1 %632 }
 0x277   :  { %vm665_vm0 = vcmp.eq.f32.partialorder %v2191_v9, %v633_v17 }
 0x278   :  { %v2351_v62 = vsel %vm665_vm0, -inf, %v2191_v9 }
 0x279   :  { %760 = vmax.xlane.f32.xlu1 %v2351_v62 }
 0x2c5   :  { %v703_v1 = vpop.xlane.xlu0 %702 }
 0x2c6   :  { %vm764_vm1 = vcmp.eq.f32.partialorder %v2196_v57, %v703_v1 }
 0x2c7   :  { %v2356_v43 = vsel %vm764_vm1, -inf, %v2196_v57 }
 0x2c8   :  { %830 = vmax.xlane.f32.xlu0 %v2356_v43 }
 0x2c9   :  { %v735_v14 = vpop.xlane.xlu0 %734  ;;  %v705_v6 = vpop.xlane.xlu1 %704 }
 0x2ca   :  { %vm780_vm2 = vcmp.eq.f32.partialorder %v2202_v45, %v735_v14  ;;  %vm765_vm3 = vcmp.eq.f32.partialorder %v2205_v48, %v705_v6 }
 0x2cb   :  { %v2362_v17 = vsel %vm780_vm2, -inf, %v2202_v45  ;;  %v2365_v9 = vsel %vm765_vm3, -inf, %v2205_v48 }
 0x2cc   :  { %862 = vmax.xlane.f32.xlu0 %v2362_v17  ;;  %832 = vmax.xlane.f32.xlu1 %v2365_v9 }
 0x2cd   :  { %v699_v57 = vpop.xlane.xlu0 %698  ;;  %v737_v1 = vpop.xlane.xlu1 %736 }
 0x2ce   :  { %vm762_vm4 = vcmp.eq.f32.partialorder %v2212_v49, %v699_v57  ;;  %vm781_vm5 = vcmp.eq.f32.partialorder %v2215_v44, %v737_v1 }
 0x2cf   :  { %v2372_v14 = vsel %vm762_vm4, -inf, %v2212_v49  ;;  %v2375_v6 = vsel %vm781_vm5, -inf, %v2215_v44 }
 0x2d0   :  { %826 = vmax.xlane.f32.xlu0 %v2372_v14  ;;  %864 = vmax.xlane.f32.xlu1 %v2375_v6 }
 0x2d1   :  { %v731_v48 = vpop.xlane.xlu0 %730 }
 0x2d2   :  { %vm778_vm6 = vcmp.eq.f32.partialorder %v2222_v47, %v731_v48  ;;  %v701_v45 = vpop.xlane.xlu1 %700 }
 0x2d3   :  { %v2381_v46 = vsel %vm778_vm6, -inf, %v2222_v47  ;;  %vm763_vm7 = vcmp.eq.f32.partialorder %v2226_v59, %v701_v45 }
 0x2d4   :  { %v2385_v57 = vsel %vm763_vm7, -inf, %v2226_v59  ;;  %858 = vmax.xlane.f32.xlu0 %v2381_v46 }
 0x2d5   :  { %828 = vmax.xlane.f32.xlu1 %v2385_v57 }
 0x2d6   :  { %v711_v49 = vpop.xlane.xlu0 %710  ;;  %v733_v44 = vpop.xlane.xlu1 %732 }
 0x2d7   :  { %vm768_vm8 = vcmp.eq.f32.partialorder %v2232_v55, %v711_v49  ;;  %vm779_vm9 = vcmp.eq.f32.partialorder %v2235_v56, %v733_v44 }
 0x2d8   :  { %v2392_v1 = vsel %vm768_vm8, -inf, %v2232_v55  ;;  %v2395_v47 = vsel %vm779_vm9, -inf, %v2235_v56 }
 0x2d9   :  { %838 = vmax.xlane.f32.xlu0 %v2392_v1  ;;  %860 = vmax.xlane.f32.xlu1 %v2395_v47 }
 0x2da   :  { %v743_v59 = vpop.xlane.xlu0 %742  ;;  %v713_v48 = vpop.xlane.xlu1 %712 }
 0x2db   :  { %vm784_vm10 = vcmp.eq.f32.partialorder %v2242_v60, %v743_v59  ;;  %vm769_vm11 = vcmp.eq.f32.partialorder %v2245_v52, %v713_v48 }
 0x2dc   :  { %v2402_v45 = vsel %vm784_vm10, -inf, %v2242_v60  ;;  %v2405_v49 = vsel %vm769_vm11, -inf, %v2245_v52 }
 0x2dd   :  { %870 = vmax.xlane.f32.xlu0 %v2402_v45  ;;  %840 = vmax.xlane.f32.xlu1 %v2405_v49 }
 0x2de   :  { %v707_v55 = vpop.xlane.xlu0 %706  ;;  %v745_v56 = vpop.xlane.xlu1 %744 }
 0x2df   :  { %vm766_vm12 = vcmp.eq.f32.partialorder %v2252_v63, %v707_v55  ;;  %vm785_vm13 = vcmp.eq.f32.partialorder %v2255_v0, %v745_v56 }
 0x2e0   :  { %v2412_v44 = vsel %vm766_vm12, -inf, %v2252_v63  ;;  %v2415_v59 = vsel %vm785_vm13, -inf, %v2255_v0 }
 0x2e1   :  { %834 = vmax.xlane.f32.xlu0 %v2412_v44  ;;  %872 = vmax.xlane.f32.xlu1 %v2415_v59 }
 0x2e2   :  { %v739_v60 = vpop.xlane.xlu0 %738  ;;  %v709_v52 = vpop.xlane.xlu1 %708 }
 0x2e3   :  { %vm782_vm14 = vcmp.eq.f32.partialorder %v2262_v3, %v739_v60  ;;  %vm767_vm15 = vcmp.eq.f32.partialorder %v2265_v4, %v709_v52 }
 0x2e4   :  { %v2422_v48 = vsel %vm782_vm14, -inf, %v2262_v3  ;;  %v2425_v55 = vsel %vm767_vm15, -inf, %v2265_v4 }
 0x2e5   :  { %866 = vmax.xlane.f32.xlu0 %v2422_v48  ;;  %836 = vmax.xlane.f32.xlu1 %v2425_v55 }
 0x2e6   :  { %v719_v63 = vpop.xlane.xlu0 %718  ;;  %v741_v0 = vpop.xlane.xlu1 %740 }
 0x2e7   :  { %vm772_vm0 = vcmp.eq.f32.partialorder %v2272_v7, %v719_v63  ;;  %vm783_vm1 = vcmp.eq.f32.partialorder %v2275_v8, %v741_v0 }
 0x2e8   :  { %v2432_v56 = vsel %vm772_vm0, -inf, %v2272_v7  ;;  %v2435_v60 = vsel %vm783_vm1, -inf, %v2275_v8 }
 0x2e9   :  { %846 = vmax.xlane.f32.xlu0 %v2432_v56  ;;  %868 = vmax.xlane.f32.xlu1 %v2435_v60 }
 0x2ea   :  { %v751_v3 = vpop.xlane.xlu0 %750  ;;  %v721_v4 = vpop.xlane.xlu1 %720 }
 0x2eb   :  { %vm788_vm2 = vcmp.eq.f32.partialorder %v2282_v11, %v751_v3  ;;  %vm773_vm3 = vcmp.eq.f32.partialorder %v2285_v12, %v721_v4 }
 0x2ec   :  { %v2442_v52 = vsel %vm788_vm2, -inf, %v2282_v11  ;;  %v2445_v63 = vsel %vm773_vm3, -inf, %v2285_v12 }
 0x2ed   :  { %878 = vmax.xlane.f32.xlu0 %v2442_v52  ;;  %848 = vmax.xlane.f32.xlu1 %v2445_v63 }
 0x2ee   :  { %v715_v7 = vpop.xlane.xlu0 %714  ;;  %v753_v8 = vpop.xlane.xlu1 %752 }
 0x2ef   :  { %vm770_vm4 = vcmp.eq.f32.partialorder %v2292_v15, %v715_v7  ;;  %vm789_vm5 = vcmp.eq.f32.partialorder %v2295_v16, %v753_v8 }
 0x2f0   :  { %v2452_v0 = vsel %vm770_vm4, -inf, %v2292_v15  ;;  %v2455_v3 = vsel %vm789_vm5, -inf, %v2295_v16 }
 0x2f1   :  { %842 = vmax.xlane.f32.xlu0 %v2452_v0  ;;  %880 = vmax.xlane.f32.xlu1 %v2455_v3 }
 0x2f2   :  { %v747_v11 = vpop.xlane.xlu0 %746  ;;  %v717_v12 = vpop.xlane.xlu1 %716 }
 0x2f3   :  { %vm786_vm6 = vcmp.eq.f32.partialorder %v2302_v51, %v747_v11  ;;  %vm771_vm7 = vcmp.eq.f32.partialorder %v2305_v53, %v717_v12 }
 0x2f4   :  { %v2462_v4 = vsel %vm786_vm6, -inf, %v2302_v51  ;;  %v2465_v7 = vsel %vm771_vm7, -inf, %v2305_v53 }
 0x2f5   :  { %874 = vmax.xlane.f32.xlu0 %v2462_v4  ;;  %844 = vmax.xlane.f32.xlu1 %v2465_v7 }
 0x2f6   :  { %v727_v15 = vpop.xlane.xlu0 %726  ;;  %v749_v16 = vpop.xlane.xlu1 %748 }
 0x2f7   :  { %vm776_vm8 = vcmp.eq.f32.partialorder %v2312_v58, %v727_v15  ;;  %vm787_vm9 = vcmp.eq.f32.partialorder %v2315_v61, %v749_v16 }
 0x2f8   :  { %v2472_v8 = vsel %vm776_vm8, -inf, %v2312_v58  ;;  %v2475_v11 = vsel %vm787_vm9, -inf, %v2315_v61 }
 0x2f9   :  { %854 = vmax.xlane.f32.xlu0 %v2472_v8  ;;  %876 = vmax.xlane.f32.xlu1 %v2475_v11 }
 0x2fa   :  { %v723_v51 = vpop.xlane.xlu0 %722  ;;  %v729_v53 = vpop.xlane.xlu1 %728 }
 0x2fb   :  { %vm774_vm10 = vcmp.eq.f32.partialorder %v2322_v2, %v723_v51  ;;  %vm777_vm11 = vcmp.eq.f32.partialorder %v2325_v5, %v729_v53 }
 0x2fc   :  { %v2482_v12 = vsel %vm774_vm10, -inf, %v2322_v2  ;;  %v2485_v15 = vsel %vm777_vm11, -inf, %v2325_v5 }
 0x2fd   :  { %850 = vmax.xlane.f32.xlu0 %v2482_v12  ;;  %856 = vmax.xlane.f32.xlu1 %v2485_v15 }
 0x2fe   :  { %v755_v58 = vpop.xlane.xlu0 %754  ;;  %v725_v61 = vpop.xlane.xlu1 %724 }
 0x2ff   :  { %vm790_vm12 = vcmp.eq.f32.partialorder %v2332_v10, %v755_v58  ;;  %vm775_vm13 = vcmp.eq.f32.partialorder %v2335_v13, %v725_v61 }
 0x300   :  { %v2492_v16 = vsel %vm790_vm12, -inf, %v2332_v10  ;;  %v2495_v51 = vsel %vm775_vm13, -inf, %v2335_v13 }
 0x301   :  { %882 = vmax.xlane.f32.xlu0 %v2492_v16  ;;  %852 = vmax.xlane.f32.xlu1 %v2495_v51 }
 0x302   :  { %v759_v2 = vpop.xlane.xlu0 %758  ;;  %v757_v5 = vpop.xlane.xlu1 %756 }
 0x303   :  { %vm792_vm14 = vcmp.eq.f32.partialorder %v2342_v50, %v759_v2  ;;  %vm791_vm15 = vcmp.eq.f32.partialorder %v2345_v54, %v757_v5 }
 0x304   :  { %v2502_v53 = vsel %vm792_vm14, -inf, %v2342_v50  ;;  %v2505_v58 = vsel %vm791_vm15, -inf, %v2345_v54 }
 0x305   :  { %886 = vmax.xlane.f32.xlu0 %v2502_v53  ;;  %884 = vmax.xlane.f32.xlu1 %v2505_v58 }
 0x306   :  { %v761_v10 = vpop.xlane.xlu1 %760 }
 0x307   :  { %vm793_vm0 = vcmp.eq.f32.partialorder %v2351_v62, %v761_v10 }
 0x308   :  { %v2511_v13 = vsel %vm793_vm0, -inf, %v2351_v62 }
 0x309   :  { %888 = vmax.xlane.f32.xlu1 %v2511_v13 }
 0x355   :  { %v831_v61 = vpop.xlane.xlu0 %830 }
 0x356   :  { %vm892_vm1 = vcmp.eq.f32.partialorder %v2356_v43, %v831_v61 }
 0x357   :  { %v924_v50 = vsel %vm892_vm1, -inf, %v2356_v43 }
 0x358   :  { %958 = vmax.xlane.f32.xlu0 %v924_v50 }
 0x359   :  { %v863_v54 = vpop.xlane.xlu0 %862  ;;  %v833_v2 = vpop.xlane.xlu1 %832 }
 0x35a   :  { %vm908_vm2 = vcmp.eq.f32.partialorder %v2362_v17, %v863_v54  ;;  %vm893_vm3 = vcmp.eq.f32.partialorder %v2365_v9, %v833_v2 }
 0x35b   :  { %v940_v5 = vsel %vm908_vm2, -inf, %v2362_v17  ;;  %v925_v10 = vsel %vm893_vm3, -inf, %v2365_v9 }
 0x35c   :  { %990 = vmax.xlane.f32.xlu0 %v940_v5  ;;  %960 = vmax.xlane.f32.xlu1 %v925_v10 }
 0x35d   :  { %v827_v62 = vpop.xlane.xlu0 %826  ;;  %v865_v42 = vpop.xlane.xlu1 %864 }
 0x35e   :  { %vm890_vm4 = vcmp.eq.f32.partialorder %v2372_v14, %v827_v62  ;;  %vm909_vm5 = vcmp.eq.f32.partialorder %v2375_v6, %v865_v42 }
 0x35f   :  { %v922_v43 = vsel %vm890_vm4, -inf, %v2372_v14  ;;  %v941_v61 = vsel %vm909_vm5, -inf, %v2375_v6 }
 0x360   :  { %954 = vmax.xlane.f32.xlu0 %v922_v43  ;;  %992 = vmax.xlane.f32.xlu1 %v941_v61 }
 0x361   :  { %v859_v50 = vpop.xlane.xlu0 %858 }
 0x362   :  { %vm906_vm6 = vcmp.eq.f32.partialorder %v2381_v46, %v859_v50  ;;  %v829_v17 = vpop.xlane.xlu1 %828 }
 0x363   :  { %v938_v9 = vsel %vm906_vm6, -inf, %v2381_v46  ;;  %vm891_vm7 = vcmp.eq.f32.partialorder %v2385_v57, %v829_v17 }
 0x364   :  { %v923_v54 = vsel %vm891_vm7, -inf, %v2385_v57  ;;  %986 = vmax.xlane.f32.xlu0 %v938_v9 }
 0x365   :  { %956 = vmax.xlane.f32.xlu1 %v923_v54 }
 0x366   :  { %v839_v2 = vpop.xlane.xlu0 %838  ;;  %v861_v42 = vpop.xlane.xlu1 %860 }
 0x367   :  { %vm896_vm8 = vcmp.eq.f32.partialorder %v2392_v1, %v839_v2  ;;  %vm907_vm9 = vcmp.eq.f32.partialorder %v2395_v47, %v861_v42 }
 0x368   :  { %v928_v14 = vsel %vm896_vm8, -inf, %v2392_v1  ;;  %v939_v6 = vsel %vm907_vm9, -inf, %v2395_v47 }
 0x369   :  { %966 = vmax.xlane.f32.xlu0 %v928_v14  ;;  %988 = vmax.xlane.f32.xlu1 %v939_v6 }
 0x36a   :  { %v871_v5 = vpop.xlane.xlu0 %870  ;;  %v841_v46 = vpop.xlane.xlu1 %840 }
 0x36b   :  { %vm912_vm10 = vcmp.eq.f32.partialorder %v2402_v45, %v871_v5  ;;  %vm897_vm11 = vcmp.eq.f32.partialorder %v2405_v49, %v841_v46 }
 0x36c   :  { %v944_v57 = vsel %vm912_vm10, -inf, %v2402_v45  ;;  %v929_v10 = vsel %vm897_vm11, -inf, %v2405_v49 }
 0x36d   :  { %998 = vmax.xlane.f32.xlu0 %v944_v57  ;;  %968 = vmax.xlane.f32.xlu1 %v929_v10 }
 0x36e   :  { %v835_v62 = vpop.xlane.xlu0 %834  ;;  %v873_v43 = vpop.xlane.xlu1 %872 }
 0x36f   :  { %vm894_vm12 = vcmp.eq.f32.partialorder %v2412_v44, %v835_v62  ;;  %vm913_vm13 = vcmp.eq.f32.partialorder %v2415_v59, %v873_v43 }
 0x370   :  { %v926_v1 = vsel %vm894_vm12, -inf, %v2412_v44  ;;  %v945_v47 = vsel %vm913_vm13, -inf, %v2415_v59 }
 0x371   :  { %962 = vmax.xlane.f32.xlu0 %v926_v1  ;;  %1000 = vmax.xlane.f32.xlu1 %v945_v47 }
 0x372   :  { %v867_v61 = vpop.xlane.xlu0 %866  ;;  %v837_v50 = vpop.xlane.xlu1 %836 }
 0x373   :  { %vm910_vm14 = vcmp.eq.f32.partialorder %v2422_v48, %v867_v61  ;;  %vm895_vm15 = vcmp.eq.f32.partialorder %v2425_v55, %v837_v50 }
 0x374   :  { %v942_v45 = vsel %vm910_vm14, -inf, %v2422_v48  ;;  %v927_v49 = vsel %vm895_vm15, -inf, %v2425_v55 }
 0x375   :  { %994 = vmax.xlane.f32.xlu0 %v942_v45  ;;  %964 = vmax.xlane.f32.xlu1 %v927_v49  ;;  %v1357_v45 = vmul.f32 -1.442695, %v1940_v19  ;;  %v1342_v49 = vmul.f32 -1.442695, %v1948_v24 }
 0x376   :  { %v847_v17 = vpop.xlane.xlu0 %846  ;;  %v869_v9 = vpop.xlane.xlu1 %868 }
 0x377   :  { %vm900_vm0 = vcmp.eq.f32.partialorder %v2432_v56, %v847_v17  ;;  %vm911_vm1 = vcmp.eq.f32.partialorder %v2435_v60, %v869_v9  ;;  %v1339_v17 = vmul.f32 -1.442695, %v1943_v20  ;;  %v1356_v9 = vmul.f32 -1.442695, %v1954_v25 }
 0x378   :  { %v932_v44 = vsel %vm900_vm0, -inf, %v2432_v56  ;;  %v943_v59 = vsel %vm911_vm1, -inf, %v2435_v60 }
 0x379   :  { %974 = vmax.xlane.f32.xlu0 %v932_v44  ;;  %996 = vmax.xlane.f32.xlu1 %v943_v59  ;;  %v1345_v59 = vmul.f32 -1.442695, %v1958_v26 }
 0x37a   :  { %v879_v54 = vpop.xlane.xlu0 %878  ;;  %v849_v2 = vpop.xlane.xlu1 %848 }
 0x37b   :  { %vm916_vm2 = vcmp.eq.f32.partialorder %v2442_v52, %v879_v54  ;;  %vm901_vm3 = vcmp.eq.f32.partialorder %v2445_v63, %v849_v2  ;;  %v1346_v54 = vmul.f32 -1.442695, %v1966_v29 }
 0x37c   :  { %v948_v48 = vsel %vm916_vm2, -inf, %v2442_v52  ;;  %v933_v55 = vsel %vm901_vm3, -inf, %v2445_v63 }
 0x37d   :  { %1006 = vmax.xlane.f32.xlu0 %v948_v48  ;;  %976 = vmax.xlane.f32.xlu1 %v933_v55 }
 0x37e   :  { %v843_v42 = vpop.xlane.xlu0 %842  ;;  %v881_v14 = vpop.xlane.xlu1 %880 }
 0x37f   :  { %vm898_vm4 = vcmp.eq.f32.partialorder %v2452_v0, %v843_v42  ;;  %vm917_vm5 = vcmp.eq.f32.partialorder %v2455_v3, %v881_v14  ;;  %v1361_v42 = vmul.f32 -1.442695, %v1963_v28 }
 0x380   :  { %v930_v56 = vsel %vm898_vm4, -inf, %v2452_v0  ;;  %v949_v60 = vsel %vm917_vm5, -inf, %v2455_v3 }
 0x381   :  { %970 = vmax.xlane.f32.xlu0 %v930_v56  ;;  %1008 = vmax.xlane.f32.xlu1 %v949_v60 }
 0x382   :  { %v875_v6 = vpop.xlane.xlu0 %874  ;;  %v845_v5 = vpop.xlane.xlu1 %844 }
 0x383   :  { %vm914_vm6 = vcmp.eq.f32.partialorder %v2462_v4, %v875_v6  ;;  %vm899_vm7 = vcmp.eq.f32.partialorder %v2465_v7, %v845_v5  ;;  %v1343_v5 = vmul.f32 -1.442695, %v1961_v27 }
 0x384   :  { %v946_v52 = vsel %vm914_vm6, -inf, %v2462_v4  ;;  %v931_v63 = vsel %vm899_vm7, -inf, %v2465_v7 }
 0x385   :  { %1002 = vmax.xlane.f32.xlu0 %v946_v52  ;;  %972 = vmax.xlane.f32.xlu1 %v931_v63 }
 0x386   :  { %v855_v46 = vpop.xlane.xlu0 %854  ;;  %v877_v57 = vpop.xlane.xlu1 %876 }
 0x387   :  { %vm904_vm8 = vcmp.eq.f32.partialorder %v2472_v8, %v855_v46  ;;  %vm915_vm9 = vcmp.eq.f32.partialorder %v2475_v11, %v877_v57 }
 0x388   :  { %v936_v0 = vsel %vm904_vm8, -inf, %v2472_v8  ;;  %v947_v3 = vsel %vm915_vm9, -inf, %v2475_v11 }
 0x389   :  { %982 = vmax.xlane.f32.xlu0 %v936_v0  ;;  %1004 = vmax.xlane.f32.xlu1 %v947_v3  ;;  %v1362_v0 = vmul.f32 -1.442695, %v1972_v32  ;;  %v1344_v3 = vmul.f32 -1.442695, %v1970_v31 }
 0x38a   :  { %v851_v10 = vpop.xlane.xlu0 %850  ;;  %v857_v62 = vpop.xlane.xlu1 %856 }
 0x38b   :  { %vm902_vm10 = vcmp.eq.f32.partialorder %v2482_v12, %v851_v10  ;;  %vm905_vm11 = vcmp.eq.f32.partialorder %v2485_v15, %v857_v62 }
 0x38c   :  { %v934_v4 = vsel %vm902_vm10, -inf, %v2482_v12  ;;  %v937_v7 = vsel %vm905_vm11, -inf, %v2485_v15 }
 0x38d   :  { %978 = vmax.xlane.f32.xlu0 %v934_v4  ;;  %984 = vmax.xlane.f32.xlu1 %v937_v7 }
 0x38e   :  { %v883_v43 = vpop.xlane.xlu0 %882  ;;  %v853_v1 = vpop.xlane.xlu1 %852 }
 0x38f   :  { %vm918_vm12 = vcmp.eq.f32.partialorder %v2492_v16, %v883_v43  ;;  %vm903_vm13 = vcmp.eq.f32.partialorder %v2495_v51, %v853_v1  ;;  %v1359_v43 = vmul.f32 -1.442695, %v1968_v30 }
 0x390   :  { %v950_v8 = vsel %vm918_vm12, -inf, %v2492_v16  ;;  %v935_v11 = vsel %vm903_vm13, -inf, %v2495_v51  ;;  %v1341_v51 = vmul.f32 -1.442695, %v1938_v18 }
 0x391   :  { %1010 = vmax.xlane.f32.xlu0 %v950_v8  ;;  %980 = vmax.xlane.f32.xlu1 %v935_v11 }
 0x392   :  { %v887_v47 = vpop.xlane.xlu0 %886  ;;  %v885_v61 = vpop.xlane.xlu1 %884  ;;  %1486 = vpow2.f32 %v1341_v51 }
 0x393   :  { %vm920_vm14 = vcmp.eq.f32.partialorder %v2502_v53, %v887_v47  ;;  %vm919_vm15 = vcmp.eq.f32.partialorder %v2505_v58, %v885_v61  ;;  %1488 = vpow2.f32 %v1357_v45 }
 0x394   :  { %v952_v12 = vsel %vm920_vm14, -inf, %v2502_v53  ;;  %v951_v15 = vsel %vm919_vm15, -inf, %v2505_v58  ;;  %v1358_v53 = vmul.f32 -1.442695, %v1950_v22  ;;  %1490 = vpow2.f32 %v1342_v49 }
 0x395   :  { %1014 = vmax.xlane.f32.xlu0 %v952_v12  ;;  %1012 = vmax.xlane.f32.xlu1 %v951_v15  ;;  %v1355_v58 = vmul.f32 -1.442695, %v1946_v21  ;;  %1492 = vpow2.f32 %v1339_v17  ;;  %v1360_v12 = vmul.f32 -1.442695, %v1974_v33 }
 0x396   :  { %v889_v50 = vpop.xlane.xlu1 %888  ;;  %1494 = vpow2.f32 %v1358_v53 }
 0x397   :  { %vm921_vm0 = vcmp.eq.f32.partialorder %v2511_v13, %v889_v50  ;;  %1496 = vpow2.f32 %v1355_v58  ;;  %v1350_v58 = vmul.f32 -1.442695, %v1986_v37 }
 0x398   :  { %v953_v16 = vsel %vm921_vm0, -inf, %v2511_v13  ;;  %v1340_v13 = vmul.f32 -1.442695, %v1952_v23 }
 0x399   :  { %1016 = vmax.xlane.f32.xlu1 %v953_v16  ;;  %v1349_v16 = vmul.f32 -1.442695, %v1978_v34 }
 0x39a   :  { %1498 = vpow2.f32 %v1340_v13 }
 0x39b   :  { %1500 = vpow2.f32 %v1356_v9 }
 0x39c   :  { %v1487_v44 = vpop.eup %1486  ;;  %1502 = vpow2.f32 %v1345_v59 }
 0x39d   :  { %v1489_v2 = vpop.eup %1488  ;;  %v1148_v48 = vadd.f32 1.0, %v1487_v44  ;;  %1504 = vpow2.f32 %v1346_v54  ;;  %v1365_v54 = vmul.f32 -1.442695, %v1983_v36 }
 0x39e   :  { %v1491_v55 = vpop.eup %1490  ;;  %v1164_v56 = vadd.f32 1.0, %v1489_v2 }
 0x39f   :  { %v1493_v14 = vpop.eup %1492  ;;  %1506 = vrcp.f32 %v1148_v48  ;;  %v1149_v6 = vadd.f32 1.0, %v1491_v55  ;;  %v1347_v48 = vmul.f32 -1.442695, %v1981_v35 }
 0x3a0   :  { %v1495_v60 = vpop.eup %1494  ;;  %v1146_v52 = vadd.f32 1.0, %v1493_v14  ;;  %1508 = vpow2.f32 %v1361_v42 }
 0x3a1   :  { %v1497_v63 = vpop.eup %1496  ;;  %1510 = vrcp.f32 %v1164_v56  ;;  %v1165_v46 = vadd.f32 1.0, %v1495_v60  ;;  %v1348_v56 = vmul.f32 -1.442695, %v1988_v38 }
 0x3a2   :  { %1512 = vrcp.f32 %v1149_v6  ;;  %v1162_v62 = vadd.f32 1.0, %v1497_v63 }
 0x3a3   :  { %1514 = vpow2.f32 %v1343_v5 }
 0x3a4   :  { %v1499_v57 = vpop.eup %1498  ;;  %1516 = vrcp.f32 %v1146_v52  ;;  %v1366_v52 = vmul.f32 -1.442695, %v1992_v40 }
 0x3a5   :  { %v1501_v10 = vpop.eup %1500  ;;  %1518 = vrcp.f32 %v1165_v46  ;;  %v1147_v7 = vadd.f32 1.0, %v1499_v57 }
 0x3a6   :  { %v1503_v4 = vpop.eup %1502  ;;  %1520 = vpow2.f32 %v1362_v0  ;;  %v1163_v8 = vadd.f32 1.0, %v1501_v10 }
 0x3a7   :  { %v1505_v1 = vpop.eup %1504  ;;  %1522 = vpow2.f32 %v1344_v3  ;;  %v1152_v61 = vadd.f32 1.0, %v1503_v4  ;;  %v1363_v4 = vmul.f32 -1.442695, %v1990_v39 }
 0x3a8   :  { %1524 = vrcp.f32 %v1162_v62  ;;  %v1153_v45 = vadd.f32 1.0, %v1505_v1 }
 0x3a9   :  { %v1507_v47 = vpop.eup %1506  ;;  %1526 = vrcp.f32 %v1147_v7 }
 0x3aa   :  { %v1509_v50 = vpop.eup %1508  ;;  %1528 = vpow2.f32 %v1359_v43 }
 0x3ab   :  { %v1511_v51 = vpop.eup %1510  ;;  %1530 = vrcp.f32 %v1163_v8  ;;  %v1168_v13 = vadd.f32 1.0, %v1509_v50 }
 0x3ac   :  { %v1513_v53 = vpop.eup %1512  ;;  %1532 = vrcp.f32 %v1152_v61 }
 0x3ad   :  { %1534 = vpow2.f32 %v1360_v12  ;;  %v2682_v12 = vld [vmem:[#allocation5_spill] sm:$0xff] }
 0x3ae   :  { %1536 = vpow2.f32 %v1349_v16 }
 0x3af   :  { %1538 = vrcp.f32 %v1153_v45 }
 0x3b0   :  { %1540 = vpow2.f32 %v1350_v58 }
 0x3b1   :  { %1542 = vrcp.f32 %v1168_v13 }
 0x3b2   :  { %1544 = vpow2.f32 %v1365_v54 }
 0x3e5   :  { %v959_v11 = vpop.xlane.xlu0 %958 }
 0x3e6   :  { %vm1020_vm1 = vcmp.ge.f32.partialorder %v1938_v18, %v959_v11  ;;  %v1515_v18 = vpop.eup %1514  ;;  %1546 = vpow2.f32 %v1347_v48 }
 0x3e7   :  { %v1244_v15 = vsel %vm1020_vm1, %v1507_v47, 0.0  ;;  %v1517_v59 = vpop.eup %1516  ;;  %v1150_v14 = vadd.f32 1.0, %v1515_v18 }
 0x3e8   :  { %1276 = vst [vmem:[#allocation2 + $0x10] sm:$0xff] %v1244_v15  ;;  %v1519_v2 = vpop.eup %1518  ;;  %v1353_v15 = vmul.f32 -1.442695, %v2682_v12 }
 0x3e9   :  { %v991_v49 = vpop.xlane.xlu0 %990  ;;  %v961_v17 = vpop.xlane.xlu1 %960  ;;  %1548 = vrcp.f32 %v1150_v14 }
 0x3ea   :  { %vm1036_vm2 = vcmp.ge.f32.partialorder %v1940_v19, %v991_v49  ;;  %vm1021_vm3 = vcmp.ge.f32.partialorder %v1948_v24, %v961_v17  ;;  %v1521_v19 = vpop.eup %1520  ;;  %1550 = vpow2.f32 %v1348_v56 }
 0x3eb   :  { %v1260_v9 = vsel %vm1036_vm2, %v1511_v51, 0.0  ;;  %v1245_v44 = vsel %vm1021_vm3, %v1513_v53, 0.0  ;;  %v1523_v24 = vpop.eup %1522  ;;  %v1169_v46 = vadd.f32 1.0, %v1521_v19  ;;  %1552 = vpow2.f32 %v1366_v52  ;;  %v2683_v53 = vld [vmem:[#allocation6_spill] sm:$0xff] }
 0x3ec   :  { %1292 = vst [vmem:[#allocation2 + $0x90] sm:$0xff] %v1260_v9  ;;  %1277 = vst [vmem:[#allocation2 + $0x18] sm:$0xff] %v1245_v44  ;;  %v1525_v5 = vpop.eup %1524  ;;  %v1151_v3 = vadd.f32 1.0, %v1523_v24  ;;  %v1351_v58 = vmul.f32 -1.442695, %v2683_v53  ;;  %v2684_v44 = vld [vmem:[#allocation8_spill] sm:$0xff] }
 0x3ed   :  { %v955_v55 = vpop.xlane.xlu0 %954  ;;  %v993_v42 = vpop.xlane.xlu1 %992  ;;  %1554 = vrcp.f32 %v1169_v46 }
 0x3ee   :  { %vm1018_vm4 = vcmp.ge.f32.partialorder %v1943_v20, %v955_v55  ;;  %vm1037_vm5 = vcmp.ge.f32.partialorder %v1950_v22, %v993_v42  ;;  %v1527_v63 = vpop.eup %1526  ;;  %1556 = vrcp.f32 %v1151_v3 }
 0x3ef   :  { %v1242_v60 = vsel %vm1018_vm4, %v1517_v59, 0.0  ;;  %v1261_v6 = vsel %vm1037_vm5, %v1519_v2, 0.0  ;;  %v1529_v0 = vpop.eup %1528  ;;  %1558 = vpow2.f32 %v1363_v4  ;;  %v1354_v59 = vmul.f32 -1.442695, %v2684_v44 }
 0x3f0   :  { %1274 = vst [vmem:[#allocation2] sm:$0xff] %v1242_v60  ;;  %1293 = vst [vmem:[#allocation2 + $0x98] sm:$0xff] %v1261_v6  ;;  %v1531_v22 = vpop.eup %1530  ;;  %v1166_v1 = vadd.f32 1.0, %v1529_v0  ;;  %v2686_v60 = vld [vmem:[#allocation10_spill] sm:$0xff] }
 0x3f1   :  { %v987_v57 = vpop.xlane.xlu0 %986  ;;  %v1533_v62 = vpop.eup %1532  ;;  %v1367_v6 = vmul.f32 -1.442695, %v2686_v60 }
 0x3f2   :  { %vm1034_vm6 = vcmp.ge.f32.partialorder %v1946_v21, %v987_v57  ;;  %v957_v20 = vpop.xlane.xlu1 %956  ;;  %v1535_v43 = vpop.eup %1534  ;;  %v1364_v21 = vmul.f32 -1.442695, %v1995_v41  ;;  %1560 = vrcp.f32 %v1166_v1 }
 0x3f3   :  { %v1258_v10 = vsel %vm1034_vm6, %v1525_v5, 0.0  ;;  %vm1019_vm7 = vcmp.ge.f32.partialorder %v1952_v23, %v957_v20  ;;  %v1537_v8 = vpop.eup %1536  ;;  %v1167_v50 = vadd.f32 1.0, %v1535_v43 }
 0x3f4   :  { %1290 = vst [vmem:[#allocation2 + $0x80] sm:$0xff] %v1258_v10  ;;  %v1243_v7 = vsel %vm1019_vm7, %v1527_v63, 0.0  ;;  %v1539_v61 = vpop.eup %1538  ;;  %v1156_v49 = vadd.f32 1.0, %v1537_v8  ;;  %1562 = vpow2.f32 %v1364_v21 }
 0x3f5   :  { %1275 = vst [vmem:[#allocation2 + $0x8] sm:$0xff] %v1243_v7  ;;  %v1541_v23 = vpop.eup %1540  ;;  %1564 = vpow2.f32 %v1353_v15 }
 0x3f6   :  { %v967_v11 = vpop.xlane.xlu0 %966  ;;  %v989_v47 = vpop.xlane.xlu1 %988  ;;  %1566 = vrcp.f32 %v1167_v50 }
 0x3f7   :  { %vm1024_vm8 = vcmp.ge.f32.partialorder %v1958_v26, %v967_v11  ;;  %vm1035_vm9 = vcmp.ge.f32.partialorder %v1954_v25, %v989_v47  ;;  %v1543_v45 = vpop.eup %1542  ;;  %v1157_v26 = vadd.f32 1.0, %v1541_v23  ;;  %1568 = vrcp.f32 %v1156_v49 }
 0x3f8   :  { %v1248_v16 = vsel %vm1024_vm8, %v1533_v62, 0.0  ;;  %v1259_v51 = vsel %vm1035_vm9, %v1531_v22, 0.0  ;;  %v1545_v17 = vpop.eup %1544  ;;  %1570 = vpow2.f32 %v1351_v58  ;;  %v2688_v62 = vld [vmem:[#allocation12_spill] sm:$0xff] }
 0x3f9   :  { %1280 = vst [vmem:[#allocation2 + $0x30] sm:$0xff] %v1248_v16  ;;  %1291 = vst [vmem:[#allocation2 + $0x88] sm:$0xff] %v1259_v51  ;;  %v1547_v9 = vpop.eup %1546  ;;  %v1172_v55 = vadd.f32 1.0, %v1545_v17  ;;  %1572 = vrcp.f32 %v1157_v26  ;;  %v1368_v4 = vmul.f32 -1.442695, %v2688_v62 }
 0x3fa   :  { %v999_v18 = vpop.xlane.xlu0 %998  ;;  %v969_v13 = vpop.xlane.xlu1 %968  ;;  %v1154_v19 = vadd.f32 1.0, %v1547_v9  ;;  %1574 = vpow2.f32 %v1354_v59 }
 0x3fb   :  { %vm1040_vm10 = vcmp.ge.f32.partialorder %v1963_v28, %v999_v18  ;;  %vm1025_vm11 = vcmp.ge.f32.partialorder %v1966_v29, %v969_v13  ;;  %v1549_v25 = vpop.eup %1548  ;;  %v2685_v28 = vld [vmem:[#allocation9_spill] sm:$0xff]  ;;  %1576 = vrcp.f32 %v1172_v55 }
 0x3fc   :  { %v1264_v54 = vsel %vm1040_vm10, %v1543_v45, 0.0  ;;  %v1249_v2 = vsel %vm1025_vm11, %v1539_v61, 0.0  ;;  %v1551_v48 = vpop.eup %1550  ;;  %v1352_v29 = vmul.f32 -1.442695, %v2685_v28  ;;  %1578 = vrcp.f32 %v1154_v19 }
 0x3fd   :  { %1296 = vst [vmem:[#allocation2 + $0xb0] sm:$0xff] %v1264_v54  ;;  %1281 = vst [vmem:[#allocation2 + $0x38] sm:$0xff] %v1249_v2  ;;  %v1553_v42 = vpop.eup %1552  ;;  %v1155_v0 = vadd.f32 1.0, %v1551_v48 }
 0x3fe   :  { %v963_v14 = vpop.xlane.xlu0 %962  ;;  %v1001_v24 = vpop.xlane.xlu1 %1000  ;;  %v1173_v46 = vadd.f32 1.0, %v1553_v42  ;;  %1580 = vpow2.f32 %v1352_v29 }
 0x3ff   :  { %v1555_v56 = vpop.eup %1554  ;;  %vm1022_vm12 = vcmp.ge.f32.partialorder %v1961_v27, %v963_v14  ;;  %vm1041_vm13 = vcmp.ge.f32.partialorder %v1972_v32, %v1001_v24  ;;  %v2687_v27 = vld [vmem:[#allocation7_spill] sm:$0xff]  ;;  %1582 = vpow2.f32 %v1367_v6 }
 0x400   :  { %v1246_v5 = vsel %vm1022_vm12, %v1549_v25, 0.0  ;;  %v1265_v52 = vsel %vm1041_vm13, %v1555_v56, 0.0  ;;  %v1557_v63 = vpop.eup %1556  ;;  %v1369_v10 = vmul.f32 -1.442695, %v2687_v27  ;;  %1584 = vrcp.f32 %v1173_v46 }
 0x401   :  { %1278 = vst [vmem:[#allocation2 + $0x20] sm:$0xff] %v1246_v5  ;;  %1297 = vst [vmem:[#allocation2 + $0xb8] sm:$0xff] %v1265_v52  ;;  %v1559_v57 = vpop.eup %1558  ;;  %1586 = vrcp.f32 %v1155_v0 }
 0x402   :  { %v995_v20 = vpop.xlane.xlu0 %994  ;;  %v965_v22 = vpop.xlane.xlu1 %964  ;;  %v1170_v8 = vadd.f32 1.0, %v1559_v57  ;;  %1588 = vpow2.f32 %v1369_v10 }
 0x403   :  { %v1561_v3 = vpop.eup %1560  ;;  %vm1038_vm14 = vcmp.ge.f32.partialorder %v1968_v30, %v995_v20  ;;  %vm1023_vm15 = vcmp.ge.f32.partialorder %v1970_v31, %v965_v22  ;;  %v2689_v31 = vld [vmem:[#allocation11_spill] sm:$0xff]  ;;  %1590 = vpow2.f32 %v1368_v4 }
 0x404   :  { %v1563_v32 = vpop.eup %1562  ;;  %v1262_v7 = vsel %vm1038_vm14, %v1561_v3, 0.0  ;;  %v1247_v43 = vsel %vm1023_vm15, %v1557_v63, 0.0  ;;  %v1370_v23 = vmul.f32 -1.442695, %v2689_v31  ;;  %1592 = vrcp.f32 %v1170_v8 }
 0x405   :  { %v1565_v1 = vpop.eup %1564  ;;  %1294 = vst [vmem:[#allocation2 + $0xa0] sm:$0xff] %v1262_v7  ;;  %1279 = vst [vmem:[#allocation2 + $0x28] sm:$0xff] %v1247_v43  ;;  %v1171_v15 = vadd.f32 1.0, %v1563_v32 }
 0x406   :  { %v1567_v21 = vpop.eup %1566  ;;  %v975_v11 = vpop.xlane.xlu0 %974  ;;  %v1160_v45 = vadd.f32 1.0, %v1565_v1 }
 0x407   :  { %v997_v47 = vpop.xlane.xlu1 %996  ;;  %v1569_v61 = vpop.eup %1568  ;;  %vm1028_vm0 = vcmp.ge.f32.partialorder %v1978_v34, %v975_v11  ;;  %1594 = vrcp.f32 %v1171_v15 }
 0x408   :  { %vm1039_vm1 = vcmp.ge.f32.partialorder %v1974_v33, %v997_v47  ;;  %v1571_v30 = vpop.eup %1570  ;;  %v1252_v50 = vsel %vm1028_vm0, %v1569_v61, 0.0  ;;  %1596 = vpow2.f32 %v1370_v23 }
 0x409   :  { %v1263_v16 = vsel %vm1039_vm1, %v1567_v21, 0.0  ;;  %v1573_v51 = vpop.eup %1572  ;;  %1284 = vst [vmem:[#allocation2 + $0x50] sm:$0xff] %v1252_v50  ;;  %v1158_v34 = vadd.f32 1.0, %v1571_v30  ;;  %1598 = vrcp.f32 %v1160_v45 }
 0x40a   :  { %1295 = vst [vmem:[#allocation2 + $0xa8] sm:$0xff] %v1263_v16  ;;  %v1575_v49 = vpop.eup %1574  ;;  %v1007_v17 = vpop.xlane.xlu0 %1006 }
 0x40b   :  { %v977_v58 = vpop.xlane.xlu1 %976  ;;  %v1577_v18 = vpop.eup %1576  ;;  %vm1044_vm2 = vcmp.ge.f32.partialorder %v1983_v36, %v1007_v17  ;;  %v1161_v25 = vadd.f32 1.0, %v1575_v49  ;;  %1600 = vrcp.f32 %v1158_v34 }
 0x40c   :  { %vm1029_vm3 = vcmp.ge.f32.partialorder %v1986_v37, %v977_v58  ;;  %v1579_v33 = vpop.eup %1578  ;;  %v1268_v13 = vsel %vm1044_vm2, %v1577_v18, 0.0 }
 0x40d   :  { %v1253_v9 = vsel %vm1029_vm3, %v1573_v51, 0.0  ;;  %v1581_v26 = vpop.eup %1580  ;;  %1300 = vst [vmem:[#allocation2 + $0xd0] sm:$0xff] %v1268_v13  ;;  %1602 = vrcp.f32 %v1161_v25 }
 0x40e   :  { %1285 = vst [vmem:[#allocation2 + $0x58] sm:$0xff] %v1253_v9  ;;  %v1583_v59 = vpop.eup %1582  ;;  %v971_v54 = vpop.xlane.xlu0 %970  ;;  %v1159_v37 = vadd.f32 1.0, %v1581_v26 }
 0x40f   :  { %v1009_v2 = vpop.xlane.xlu1 %1008  ;;  %v1585_v48 = vpop.eup %1584  ;;  %vm1026_vm4 = vcmp.ge.f32.partialorder %v1981_v35, %v971_v54  ;;  %v1174_v14 = vadd.f32 1.0, %v1583_v59 }
 0x410   :  { %vm1045_vm5 = vcmp.ge.f32.partialorder %v1992_v40, %v1009_v2  ;;  %v1587_v36 = vpop.eup %1586  ;;  %v1250_v55 = vsel %vm1026_vm4, %v1579_v33, 0.0  ;;  %1604 = vrcp.f32 %v1159_v37 }
 0x411   :  { %v1269_v42 = vsel %vm1045_vm5, %v1585_v48, 0.0  ;;  %v1589_v19 = vpop.eup %1588  ;;  %1282 = vst [vmem:[#allocation2 + $0x40] sm:$0xff] %v1250_v55  ;;  %1606 = vrcp.f32 %v1174_v14 }
 0x412   :  { %1301 = vst [vmem:[#allocation2 + $0xd8] sm:$0xff] %v1269_v42  ;;  %v1591_v24 = vpop.eup %1590  ;;  %v1003_v56 = vpop.xlane.xlu0 %1002  ;;  %v1176_v35 = vadd.f32 1.0, %v1589_v19 }
 0x413   :  { %v973_v29 = vpop.xlane.xlu1 %972  ;;  %v1593_v6 = vpop.eup %1592  ;;  %vm1042_vm6 = vcmp.ge.f32.partialorder %v1990_v39, %v1003_v56  ;;  %v1175_v63 = vadd.f32 1.0, %v1591_v24 }
 0x414   :  { %vm1027_vm7 = vcmp.ge.f32.partialorder %v1988_v38, %v973_v29  ;;  %v1266_v40 = vsel %vm1042_vm6, %v1593_v6, 0.0  ;;  %v1595_v52 = vpop.eup %1594  ;;  %1608 = vrcp.f32 %v1176_v35 }
 0x415   :  { %v1251_v5 = vsel %vm1027_vm7, %v1587_v36, 0.0  ;;  %1298 = vst [vmem:[#allocation2 + $0xc0] sm:$0xff] %v1266_v40  ;;  %v1597_v46 = vpop.eup %1596  ;;  %1610 = vrcp.f32 %v1175_v63 }
 0x416   :  { %1283 = vst [vmem:[#allocation2 + $0x48] sm:$0xff] %v1251_v5  ;;  %v983_v57 = vpop.xlane.xlu0 %982  ;;  %v1599_v20 = vpop.eup %1598  ;;  %v1177_v22 = vadd.f32 1.0, %v1597_v46 }
 0x417   :  { %v1005_v0 = vpop.xlane.xlu1 %1004  ;;  %vm1032_vm8 = vcmp.ge.f32.partialorder %v2682_v12, %v983_v57  ;;  %v1601_v3 = vpop.eup %1600 }
 0x418   :  { %vm1043_vm9 = vcmp.ge.f32.partialorder %v1995_v41, %v1005_v0  ;;  %v1256_v39 = vsel %vm1032_vm8, %v1599_v20, 0.0  ;;  %v1603_v4 = vpop.eup %1602  ;;  %1612 = vrcp.f32 %v1177_v22 }
 0x419   :  { %v1267_v38 = vsel %vm1043_vm9, %v1595_v52, 0.0  ;;  %1288 = vst [vmem:[#allocation2 + $0x70] sm:$0xff] %v1256_v39 }
 0x41a   :  { %1299 = vst [vmem:[#allocation2 + $0xc8] sm:$0xff] %v1267_v38  ;;  %v979_v10 = vpop.xlane.xlu0 %978  ;;  %v1605_v41 = vpop.eup %1604 }
 0x41b   :  { %v985_v32 = vpop.xlane.xlu1 %984  ;;  %vm1030_vm10 = vcmp.ge.f32.partialorder %v2683_v53, %v979_v10  ;;  %v1607_v8 = vpop.eup %1606 }
 0x41c   :  { %vm1033_vm11 = vcmp.ge.f32.partialorder %v2684_v44, %v985_v32  ;;  %v1254_v7 = vsel %vm1030_vm10, %v1601_v3, 0.0 }
 0x41d   :  { %v1257_v43 = vsel %vm1033_vm11, %v1603_v4, 0.0  ;;  %1286 = vst [vmem:[#allocation2 + $0x60] sm:$0xff] %v1254_v7 }
 0x41e   :  { %1289 = vst [vmem:[#allocation2 + $0x78] sm:$0xff] %v1257_v43  ;;  %v1011_v12 = vpop.xlane.xlu0 %1010  ;;  %v1609_v53 = vpop.eup %1608 }
 0x41f   :  { %v981_v1 = vpop.xlane.xlu1 %980  ;;  %vm1046_vm12 = vcmp.ge.f32.partialorder %v2686_v60, %v1011_v12  ;;  %v1611_v61 = vpop.eup %1610 }
 0x420   :  { %vm1031_vm13 = vcmp.ge.f32.partialorder %v2685_v28, %v981_v1  ;;  %v1270_v21 = vsel %vm1046_vm12, %v1607_v8, 0.0 }
 0x421   :  { %v1255_v11 = vsel %vm1031_vm13, %v1605_v41, 0.0  ;;  %1302 = vst [vmem:[#allocation2 + $0xe0] sm:$0xff] %v1270_v21 }
 0x422   :  { %1287 = vst [vmem:[#allocation2 + $0x68] sm:$0xff] %v1255_v11  ;;  %v1015_v47 = vpop.xlane.xlu0 %1014  ;;  %v1613_v28 = vpop.eup %1612 }
 0x423   :  { %v1013_v44 = vpop.xlane.xlu1 %1012  ;;  %vm1048_vm14 = vcmp.ge.f32.partialorder %v2687_v27, %v1015_v47 }
 0x424   :  { %vm1047_vm15 = vcmp.ge.f32.partialorder %v2688_v62, %v1013_v44  ;;  %v1272_v15 = vsel %vm1048_vm14, %v1609_v53, 0.0 }
 0x425   :  { %v1271_v30 = vsel %vm1047_vm15, %v1611_v61, 0.0  ;;  %1304 = vst [vmem:[#allocation2 + $0xf0] sm:$0xff] %v1272_v15 }
 0x426   :  { %1303 = vst [vmem:[#allocation2 + $0xe8] sm:$0xff] %v1271_v30 }
 0x427   :  { %v1017_v60 = vpop.xlane.xlu1 %1016 }
 0x428   :  { %vm1049_vm0 = vcmp.ge.f32.partialorder %v2689_v31, %v1017_v60 }
 0x429   :  { %v1273_v23 = vsel %vm1049_vm0, %v1613_v28, 0.0 }
 0x42a   :  { %1305 = vst [vmem:[#allocation2 + $0xf8] sm:$0xff] %v1273_v23 }
 0x42b   :  { %1625 = shalt.err (!%p1622_p4)
}
 0x42c   :  { %s1626_s5 = scalar_lea.hbm %s2657_s3, 4096 }
 0x42d   :  { %p1627_p5 = scmp.ne.s32.totalorder %s2657_s3, %s1626_s5  ;;  %p1630_p6 = scmp.lt.u32.totalorder %s1626_s5, %s2657_s3 }
 0x42f   :  { %p1632_p7 = pnand %p1630_p6, %p1627_p5 }
 0x431   :  { %1635 = shalt.err (!%p1632_p7)
}
 0x432   :  { %s1639_s9 = smov 128   ;;  %s1640_s10 = smov 8  }
 0x433   :  { %1317 = dma.vmem_to_hbm [thread:$0]  %s1312_s28, 4096, %s2657_s3, [#allocation3], %s1639_s9, %s1639_s9, %s1640_s10  }
 0x434   :  { %1636 = dma.done.wait [#allocation3], 4096  }
 0x435   :  { %1637 = vsyncadd [#allocation3], 4294963200 }
 0x436   :  { %1321 = vsyncpa [#allocation3], 1 }

</bundles_post_ra>
